<compile_context>
chip_gen: v5e
topology: v5e:2x2
jax: 0.10.0
libtpu: 0.0.40
codegen_flags: <defaults>
</compile_context>

<pallas_src>
import functools

import jax
import jax.numpy as jnp
from jax import lax
from jax.experimental import pallas as pl
from jax.experimental.pallas import tpu as pltpu
import numpy as np


def _round_up(x, m):
    return ((x + m - 1) // m) * m


# ------------------------------ Pallas kernel ------------------------------ #

def _waveblock_kernel(x_ref, w0_ref, b0_ref, wfg_ref, bfg_ref, wr_ref, br_ref,
                      o_ref, pad_ref, *, R, K, T, TILE, HP, G, E, Cout):
    """One (batch, T-tile) grid step.

    x_ref   : (1, 1, E, Cin)        halo-extended input tile, f32
    w0_ref  : (Cin, Cout) bf16      b0_ref : (1, Cout) f32
    wfg_ref : (R, K, Cout, 2*Cout)  bf16 (filter ++ gate, fused on out-channels)
    bfg_ref : (R, 1, 2*Cout) f32
    wr_ref  : (R, Cout, Cout) bf16  br_ref : (R, 1, Cout) f32
    o_ref   : (1, 1, TILE, Cout) f32
    pad_ref : (G + E + G, Cout) f32 VMEM scratch (zero-bordered shift buffer)
    """
    t_idx = pl.program_id(1)

    # Mask of extended-tile positions that lie inside the real sequence [0, T).
    pos = t_idx * TILE - HP + lax.broadcasted_iota(jnp.int32, (E, 1), 0)
    in_seq = (pos >= 0) & (pos < T)

    # Keep the scratch borders zero (these rows realize the conv zero-padding).
    zero_border = jnp.zeros((G, Cout), jnp.float32)
    pad_ref[pl.ds(0, G)] = zero_border
    pad_ref[pl.ds(G + E, G)] = zero_border

    # First 1x1 conv (Cin -> Cout) over the extended tile.
    x = x_ref[0, 0].astype(jnp.bfloat16)                         # (E, Cin)
    h = jnp.dot(x, w0_ref[...], preferred_element_type=jnp.float32) + b0_ref[...]
    res = h[HP:HP + TILE]                                        # (TILE, Cout) f32

    for i in range(R):                                           # static unroll
        d = 2 ** i
        # Current activation (zeroed outside the sequence) into scratch center.
        pad_ref[pl.ds(G, E)] = jnp.where(in_seq, h, 0.0)

        # Fused filter+gate dilated conv: one matmul per tap -> (E, 2*Cout).
        acc = None
        for k in range(K):
            off = (k - (K - 1) // 2) * d                         # taps -d, 0, +d
            tap = pad_ref[pl.ds(G + off, E)].astype(jnp.bfloat16)
            part = jnp.dot(tap, wfg_ref[i, k],
                           preferred_element_type=jnp.float32)
            acc = part if acc is None else acc + part
        acc = acc + bfg_ref[i]

        f_act = jnp.tanh(acc[:, :Cout])
        g_act = jax.nn.sigmoid(acc[:, Cout:])
        gated = (f_act * g_act).astype(jnp.bfloat16)             # (E, Cout)

        # Residual 1x1 conv.
        h = jnp.dot(gated, wr_ref[i], preferred_element_type=jnp.float32)
        h = h + br_ref[i]
        res = res + h[HP:HP + TILE]

    o_ref[0, 0] = res.astype(o_ref.dtype)


def waveblock_pallas(x_ncw, params, *, num_rates, kernel_size, t_tile=256):
    """x_ncw: (B, C_in, T) float32.  Returns (B, C_out, T) float32."""
    assert kernel_size % 2 == 1, "kernel_size must be odd ('same' conv padding)"
    B, Cin, T = x_ncw.shape
    w0, b0, wfg, bfg, wr, br = params
    Cout = w0.shape[1]
    R, K = num_rates, kernel_size

    halo = (2 ** R - 1) * (K - 1) // 2                 # total receptive-field halo
    HP = _round_up(halo, 8)                            # tile halo, sublane aligned
    G = _round_up((2 ** max(R - 1, 0)) * (K - 1) // 2, 8)   # per-rate max halo

    TILE = min(_round_up(T, 8), _round_up(t_tile, 8))
    nt = -(-T // TILE)
    T_pad = nt * TILE
    E = TILE + 2 * HP

    # (B, C, T) -> (B, T, C), zero-pad, and materialize overlapping T tiles
    # with an HP-sample halo each side (tiny duplication: HP ~ 8 samples).
    x_btc = jnp.transpose(x_ncw, (0, 2, 1))
    x_padded = jnp.pad(x_btc, ((0, 0), (HP, HP + T_pad - T), (0, 0)))
    idx = np.arange(nt)[:, None] * TILE + np.arange(E)[None, :]   # (nt, E)
    x_tiles = x_padded[:, idx, :]                                 # (B, nt, E, Cin)

    kernel = functools.partial(_waveblock_kernel, R=R, K=K, T=T, TILE=TILE,
                               HP=HP, G=G, E=E, Cout=Cout)

    out = pl.pallas_call(
        kernel,
        out_shape=jax.ShapeDtypeStruct((B, nt, TILE, Cout), jnp.float32),
        grid_spec=pltpu.PrefetchScalarGridSpec(
            num_scalar_prefetch=0,
            grid=(B, nt),
            in_specs=[
                pl.BlockSpec((1, 1, E, Cin), lambda b, t: (b, t, 0, 0)),
                pl.BlockSpec((Cin, Cout), lambda b, t: (0, 0)),
                pl.BlockSpec((1, Cout), lambda b, t: (0, 0)),
                pl.BlockSpec((R, K, Cout, 2 * Cout), lambda b, t: (0, 0, 0, 0)),
                pl.BlockSpec((R, 1, 2 * Cout), lambda b, t: (0, 0, 0)),
                pl.BlockSpec((R, Cout, Cout), lambda b, t: (0, 0, 0)),
                pl.BlockSpec((R, 1, Cout), lambda b, t: (0, 0, 0)),
            ],
            out_specs=pl.BlockSpec((1, 1, TILE, Cout),
                                   lambda b, t: (b, t, 0, 0)),
            scratch_shapes=[pltpu.VMEM((G + E + G, Cout), jnp.float32)],
        ),
        compiler_params=pltpu.CompilerParams(
            dimension_semantics=("parallel", "parallel")),
    )(x_tiles, w0, b0, wfg, bfg, wr, br)

    out = out.reshape(B, T_pad, Cout)[:, :T, :]
    return jnp.transpose(out, (0, 2, 1))               # back to NCW


# ---------------------- parameter init (Xavier uniform) --------------------- #

def _xavier_uniform(key, shape):
    # shape = (C_out, C_in, K) torch Conv1d weight; gain = calculate_gain('relu')
    c_out, c_in, k = shape
    gain = float(np.sqrt(2.0))
    bound = gain * float(np.sqrt(6.0 / (c_in * k + c_out * k)))
    return jax.random.uniform(key, shape, jnp.float32, -bound, bound)


def init_waveblock_params(key, in_channels, out_channels, dilation_rates,
                          kernel_size=3):
    R, K = dilation_rates, kernel_size
    keys = jax.random.split(key, 1 + 3 * R)
    ki = iter(range(len(keys)))

    # torch-format weights (O, I, W); all biases zero-initialized by the module.
    w0_t = _xavier_uniform(keys[next(ki)], (out_channels, in_channels, 1))
    wf_t = jnp.stack([_xavier_uniform(keys[next(ki)], (out_channels, out_channels, K))
                      for _ in range(R)])
    wg_t = jnp.stack([_xavier_uniform(keys[next(ki)], (out_channels, out_channels, K))
                      for _ in range(R)])
    wr_t = jnp.stack([_xavier_uniform(keys[next(ki)], (out_channels, out_channels, 1))
                      for _ in range(R)])
    torch_fmt = dict(w0=w0_t, wf=wf_t, wg=wg_t, wr=wr_t)

    # Kernel format: (..., C_in, C_out) matmul matrices.  Weights in bf16
    # (accumulation stays f32 inside the kernel), biases in f32.
    w0 = jnp.transpose(w0_t[:, :, 0], (1, 0)).astype(jnp.bfloat16)       # (Cin, Cout)
    b0 = jnp.zeros((1, out_channels), jnp.float32)
    wf_k = jnp.transpose(wf_t, (0, 3, 2, 1))                              # (R, K, Cin, Cout)
    wg_k = jnp.transpose(wg_t, (0, 3, 2, 1))
    wfg = jnp.concatenate([wf_k, wg_k], axis=-1).astype(jnp.bfloat16)     # (R, K, Cout, 2*Cout)
    bfg = jnp.zeros((R, 1, 2 * out_channels), jnp.float32)
    wr = jnp.transpose(wr_t[:, :, :, 0], (0, 2, 1)).astype(jnp.bfloat16)  # (R, Cout, Cout)
    br = jnp.zeros((R, 1, out_channels), jnp.float32)

    kernel_params = (w0, b0, wfg, bfg, wr, br)
    return kernel_params, torch_fmt


# ------------------------- pure-JAX reference (check) ----------------------- #

def _conv1d_ncw(x, w_oiw, bias, dilation, padding):
    y = lax.conv_general_dilated(
        x, w_oiw, window_strides=(1,), padding=[(padding, padding)],
        rhs_dilation=(dilation,), dimension_numbers=('NCH', 'OIH', 'NCH'))
    return y + bias[None, :, None]


def waveblock_reference(x_ncw, torch_fmt, *, num_rates, kernel_size):
    Cout = torch_fmt['w0'].shape[0]
    zeros = jnp.zeros((Cout,), jnp.float32)
    x = _conv1d_ncw(x_ncw, torch_fmt['w0'], zeros, 1, 0)
    res = x
    for i in range(num_rates):
        d = 2 ** i
        pad = int(d * (kernel_size - 1) / 2)
        t = jnp.tanh(_conv1d_ncw(x, torch_fmt['wf'][i], zeros, d, pad))
        s = jax.nn.sigmoid(_conv1d_ncw(x, torch_fmt['wg'][i], zeros, d, pad))
        x = t * s
        x = _conv1d_ncw(x, torch_fmt['wr'][i], zeros, 1, 0)
        res = res + x
    return res


# ------------------------------------ main ---------------------------------- #

if __name__ == "__main__":
    B, C_IN, C_OUT, T = 2, 4, 16, 80
    DILATION_RATES, KERNEL_SIZE = 3, 3

    key = jax.random.PRNGKey(0)
    k_x, k_p = jax.random.split(key)

    x = jax.random.normal(k_x, (B, C_IN, T), dtype=jnp.float32)
    params, torch_fmt = init_waveblock_params(k_p, C_IN, C_OUT,
                                              DILATION_RATES, KERNEL_SIZE)

    # Small t_tile so the demo exercises several halo-overlapped T tiles.
    out = waveblock_pallas(x, params, num_rates=DILATION_RATES,
                           kernel_size=KERNEL_SIZE, t_tile=32)
    out = jax.block_until_ready(out)

    ref = waveblock_reference(x, torch_fmt, num_rates=DILATION_RATES,
                              kernel_size=KERNEL_SIZE)
    ref = jax.block_until_ready(ref)

    out_np, ref_np = np.asarray(out), np.asarray(ref)
    err = float(np.max(np.abs(out_np - ref_np)))
    tol = 5e-2 * max(1.0, float(np.max(np.abs(ref_np))))   # bf16 matmul operands
    if not np.isfinite(err) or err > tol:
        raise AssertionError(f"Pallas WaveBlock mismatch: max_err={err}, tol={tol}")

    print("KERNEL_OK")
</pallas_src>

<mosaic_0001>
module attributes {stable_mosaic.version = 11 : i64} {
  func.func @_waveblock_kernel(%arg0: i32, %arg1: i32, %arg2: memref<1x1x48x4xf32, #tpu.memory_space<vmem>>, %arg3: memref<4x16xbf16, #tpu.memory_space<vmem>>, %arg4: memref<1x16xf32, #tpu.memory_space<vmem>>, %arg5: memref<3x3x16x32xbf16, #tpu.memory_space<vmem>>, %arg6: memref<3x1x32xf32, #tpu.memory_space<vmem>>, %arg7: memref<3x16x16xbf16, #tpu.memory_space<vmem>>, %arg8: memref<3x1x16xf32, #tpu.memory_space<vmem>>, %arg9: memref<1x1x32x16xf32, #tpu.memory_space<vmem>>, %arg10: memref<64x16xf32, #tpu.memory_space<vmem>>) attributes {dimension_semantics = [#tpu.dimension_semantics<parallel>, #tpu.dimension_semantics<parallel>], iteration_bounds = array<i64: 2, 3>, scalar_prefetch = 0 : i64, scratch_operands = 1 : i64, tpu.core_type = #tpu.core_type<tc>, window_params = [{transform_indices = @transform_0, window_bounds = array<i64: 1, 1, 48, 4>}, {pipeline_mode = #tpu.pipeline_mode<synchronous>, transform_indices = @transform_1, window_bounds = array<i64: 4, 16>}, {pipeline_mode = #tpu.pipeline_mode<synchronous>, transform_indices = @transform_2, window_bounds = array<i64: 1, 16>}, {pipeline_mode = #tpu.pipeline_mode<synchronous>, transform_indices = @transform_3, window_bounds = array<i64: 3, 3, 16, 32>}, {pipeline_mode = #tpu.pipeline_mode<synchronous>, transform_indices = @transform_4, window_bounds = array<i64: 3, 1, 32>}, {pipeline_mode = #tpu.pipeline_mode<synchronous>, transform_indices = @transform_5, window_bounds = array<i64: 3, 16, 16>}, {pipeline_mode = #tpu.pipeline_mode<synchronous>, transform_indices = @transform_6, window_bounds = array<i64: 3, 1, 16>}, {transform_indices = @transform_7, window_bounds = array<i64: 1, 1, 32, 16>}]} {
    %c32_i32 = arith.constant 32 : i32
    %0 = arith.muli %arg1, %c32_i32 : i32
    %c8_i32 = arith.constant 8 : i32
    %1 = arith.subi %0, %c8_i32 : i32
    %2 = tpu.iota {dimensions = array<i32: 0>} : vector<48x1xi32>
    %3 = vector.broadcast %1 : i32 to vector<48x1xi32>
    %4 = arith.addi %3, %2 : vector<48x1xi32>
    %c0_i32 = arith.constant 0 : i32
    %5 = vector.broadcast %c0_i32 : i32 to vector<48x1xi32>
    %6 = arith.cmpi sge, %4, %5 : vector<48x1xi32>
    %c80_i32 = arith.constant 80 : i32
    %7 = vector.broadcast %c80_i32 : i32 to vector<48x1xi32>
    %8 = arith.cmpi slt, %4, %7 : vector<48x1xi32>
    %9 = arith.andi %6, %8 : vector<48x1xi1>
    %cst = arith.constant 0.000000e+00 : f32
    %10 = vector.broadcast %cst : f32 to vector<8x16xf32>
    %c0 = arith.constant 0 : index
    %c0_0 = arith.constant 0 : index
    %11 = vector.load %arg10[%c0, %c0_0] : memref<64x16xf32, #tpu.memory_space<vmem>>, vector<8x16xf32>
    tpu.vector_store %arg10[%c0, %c0_0], %10 {strides = array<i32>} : memref<64x16xf32, #tpu.memory_space<vmem>>, vector<8x16xf32>,
    %c56 = arith.constant 56 : index
    %c0_1 = arith.constant 0 : index
    %12 = vector.load %arg10[%c56, %c0_1] : memref<64x16xf32, #tpu.memory_space<vmem>>, vector<8x16xf32>
    tpu.vector_store %arg10[%c56, %c0_1], %10 {strides = array<i32>} : memref<64x16xf32, #tpu.memory_space<vmem>>, vector<8x16xf32>,
    %c0_2 = arith.constant 0 : index
    %c0_3 = arith.constant 0 : index
    %c0_4 = arith.constant 0 : index
    %c0_5 = arith.constant 0 : index
    %13 = vector.load %arg2[%c0_2, %c0_3, %c0_4, %c0_5] : memref<1x1x48x4xf32, #tpu.memory_space<vmem>>, vector<1x1x48x4xf32>
    %14 = vector.shape_cast %13 : vector<1x1x48x4xf32> to vector<48x4xf32>
    %15 = arith.truncf %14 : vector<48x4xf32> to vector<48x4xbf16>
    %c0_6 = arith.constant 0 : index
    %c0_7 = arith.constant 0 : index
    %16 = vector.load %arg3[%c0_6, %c0_7] : memref<4x16xbf16, #tpu.memory_space<vmem>>, vector<4x16xbf16>
    %cst_8 = arith.constant dense<0.000000e+00> : vector<48x16xf32>
    %17 = tpu.matmul %15, %16, %cst_8 {dimension_numbers = #tpu.dot_dimension_numbers<[1], [0], [0], [1], [0, 0, 1, 1], [], []>} : vector<48x4xbf16>, vector<4x16xbf16>, vector<48x16xf32> -> vector<48x16xf32>
    %c0_9 = arith.constant 0 : index
    %c0_10 = arith.constant 0 : index
    %18 = vector.load %arg4[%c0_9, %c0_10] : memref<1x16xf32, #tpu.memory_space<vmem>>, vector<1x16xf32>
    %19 = vector.broadcast %18 : vector<1x16xf32> to vector<48x16xf32>
    %20 = arith.addf %17, %19 : vector<48x16xf32>
    %21 = vector.extract_strided_slice %20 {offsets = [8, 0], sizes = [32, 16], strides = [1, 1]} : vector<48x16xf32> to vector<32x16xf32>
    %cst_11 = arith.constant 0.000000e+00 : f32
    %22 = vector.shape_cast %9 : vector<48x1xi1> to vector<48x1xi1>
    %23 = vector.broadcast %22 : vector<48x1xi1> to vector<48x16xi1>
    %24 = vector.broadcast %cst_11 : f32 to vector<48x16xf32>
    %25 = arith.select %23, %20, %24 : vector<48x16xi1>, vector<48x16xf32>
    %c8 = arith.constant 8 : index
    %c0_12 = arith.constant 0 : index
    %26 = vector.load %arg10[%c8, %c0_12] : memref<64x16xf32, #tpu.memory_space<vmem>>, vector<48x16xf32>
    tpu.vector_store %arg10[%c8, %c0_12], %25 {strides = array<i32>} : memref<64x16xf32, #tpu.memory_space<vmem>>, vector<48x16xf32>,
    %c7 = arith.constant 7 : index
    %c0_13 = arith.constant 0 : index
    %27 = vector.load %arg10[%c7, %c0_13] : memref<64x16xf32, #tpu.memory_space<vmem>>, vector<48x16xf32>
    %28 = arith.truncf %27 : vector<48x16xf32> to vector<48x16xbf16>
    %c0_14 = arith.constant 0 : index
    %c0_15 = arith.constant 0 : index
    %c0_16 = arith.constant 0 : index
    %c0_17 = arith.constant 0 : index
    %29 = vector.load %arg5[%c0_14, %c0_15, %c0_16, %c0_17] : memref<3x3x16x32xbf16, #tpu.memory_space<vmem>>, vector<1x1x16x32xbf16>
    %30 = vector.shape_cast %29 : vector<1x1x16x32xbf16> to vector<16x32xbf16>
    %cst_18 = arith.constant dense<0.000000e+00> : vector<48x32xf32>
    %31 = tpu.matmul %28, %30, %cst_18 {dimension_numbers = #tpu.dot_dimension_numbers<[1], [0], [0], [1], [0, 0, 1, 1], [], []>} : vector<48x16xbf16>, vector<16x32xbf16>, vector<48x32xf32> -> vector<48x32xf32>
    %c8_19 = arith.constant 8 : index
    %c0_20 = arith.constant 0 : index
    %32 = vector.load %arg10[%c8_19, %c0_20] : memref<64x16xf32, #tpu.memory_space<vmem>>, vector<48x16xf32>
    %33 = arith.truncf %32 : vector<48x16xf32> to vector<48x16xbf16>
    %c0_21 = arith.constant 0 : index
    %c1 = arith.constant 1 : index
    %c0_22 = arith.constant 0 : index
    %c0_23 = arith.constant 0 : index
    %34 = vector.load %arg5[%c0_21, %c1, %c0_22, %c0_23] : memref<3x3x16x32xbf16, #tpu.memory_space<vmem>>, vector<1x1x16x32xbf16>
    %35 = vector.shape_cast %34 : vector<1x1x16x32xbf16> to vector<16x32xbf16>
    %cst_24 = arith.constant dense<0.000000e+00> : vector<48x32xf32>
    %36 = tpu.matmul %33, %35, %cst_24 {dimension_numbers = #tpu.dot_dimension_numbers<[1], [0], [0], [1], [0, 0, 1, 1], [], []>} : vector<48x16xbf16>, vector<16x32xbf16>, vector<48x32xf32> -> vector<48x32xf32>
    %37 = arith.addf %31, %36 : vector<48x32xf32>
    %c9 = arith.constant 9 : index
    %c0_25 = arith.constant 0 : index
    %38 = vector.load %arg10[%c9, %c0_25] : memref<64x16xf32, #tpu.memory_space<vmem>>, vector<48x16xf32>
    %39 = arith.truncf %38 : vector<48x16xf32> to vector<48x16xbf16>
    %c0_26 = arith.constant 0 : index
    %c2 = arith.constant 2 : index
    %c0_27 = arith.constant 0 : index
    %c0_28 = arith.constant 0 : index
    %40 = vector.load %arg5[%c0_26, %c2, %c0_27, %c0_28] : memref<3x3x16x32xbf16, #tpu.memory_space<vmem>>, vector<1x1x16x32xbf16>
    %41 = vector.shape_cast %40 : vector<1x1x16x32xbf16> to vector<16x32xbf16>
    %cst_29 = arith.constant dense<0.000000e+00> : vector<48x32xf32>
    %42 = tpu.matmul %39, %41, %cst_29 {dimension_numbers = #tpu.dot_dimension_numbers<[1], [0], [0], [1], [0, 0, 1, 1], [], []>} : vector<48x16xbf16>, vector<16x32xbf16>, vector<48x32xf32> -> vector<48x32xf32>
    %43 = arith.addf %37, %42 : vector<48x32xf32>
    %c0_30 = arith.constant 0 : index
    %c0_31 = arith.constant 0 : index
    %c0_32 = arith.constant 0 : index
    %44 = vector.load %arg6[%c0_30, %c0_31, %c0_32] : memref<3x1x32xf32, #tpu.memory_space<vmem>>, vector<1x1x32xf32>
    %45 = vector.shape_cast %44 : vector<1x1x32xf32> to vector<1x32xf32>
    %46 = vector.broadcast %45 : vector<1x32xf32> to vector<48x32xf32>
    %47 = arith.addf %43, %46 : vector<48x32xf32>
    %48 = vector.extract_strided_slice %47 {offsets = [0, 0], sizes = [48, 16], strides = [1, 1]} : vector<48x32xf32> to vector<48x16xf32>
    %49 = math.tanh %48 : vector<48x16xf32>
    %50 = vector.extract_strided_slice %47 {offsets = [0, 16], sizes = [48, 16], strides = [1, 1]} : vector<48x32xf32> to vector<48x16xf32>
    %51 = arith.negf %50 : vector<48x16xf32>
    %52 = math.exp %51 : vector<48x16xf32>
    %cst_33 = arith.constant 1.000000e+00 : f32
    %53 = vector.broadcast %cst_33 : f32 to vector<48x16xf32>
    %54 = arith.addf %53, %52 : vector<48x16xf32>
    %55 = arith.divf %53, %54 : vector<48x16xf32>
    %56 = arith.mulf %49, %55 : vector<48x16xf32>
    %57 = arith.truncf %56 : vector<48x16xf32> to vector<48x16xbf16>
    %c0_34 = arith.constant 0 : index
    %c0_35 = arith.constant 0 : index
    %c0_36 = arith.constant 0 : index
    %58 = vector.load %arg7[%c0_34, %c0_35, %c0_36] : memref<3x16x16xbf16, #tpu.memory_space<vmem>>, vector<1x16x16xbf16>
    %59 = vector.shape_cast %58 : vector<1x16x16xbf16> to vector<16x16xbf16>
    %cst_37 = arith.constant dense<0.000000e+00> : vector<48x16xf32>
    %60 = tpu.matmul %57, %59, %cst_37 {dimension_numbers = #tpu.dot_dimension_numbers<[1], [0], [0], [1], [0, 0, 1, 1], [], []>} : vector<48x16xbf16>, vector<16x16xbf16>, vector<48x16xf32> -> vector<48x16xf32>
    %c0_38 = arith.constant 0 : index
    %c0_39 = arith.constant 0 : index
    %c0_40 = arith.constant 0 : index
    %61 = vector.load %arg8[%c0_38, %c0_39, %c0_40] : memref<3x1x16xf32, #tpu.memory_space<vmem>>, vector<1x1x16xf32>
    %62 = vector.shape_cast %61 : vector<1x1x16xf32> to vector<1x16xf32>
    %63 = vector.broadcast %62 : vector<1x16xf32> to vector<48x16xf32>
    %64 = arith.addf %60, %63 : vector<48x16xf32>
    %65 = vector.extract_strided_slice %64 {offsets = [8, 0], sizes = [32, 16], strides = [1, 1]} : vector<48x16xf32> to vector<32x16xf32>
    %66 = arith.addf %21, %65 : vector<32x16xf32>
    %cst_41 = arith.constant 0.000000e+00 : f32
    %67 = vector.shape_cast %9 : vector<48x1xi1> to vector<48x1xi1>
    %68 = vector.broadcast %67 : vector<48x1xi1> to vector<48x16xi1>
    %69 = vector.broadcast %cst_41 : f32 to vector<48x16xf32>
    %70 = arith.select %68, %64, %69 : vector<48x16xi1>, vector<48x16xf32>
    %c8_42 = arith.constant 8 : index
    %c0_43 = arith.constant 0 : index
    %71 = vector.load %arg10[%c8_42, %c0_43] : memref<64x16xf32, #tpu.memory_space<vmem>>, vector<48x16xf32>
    tpu.vector_store %arg10[%c8_42, %c0_43], %70 {strides = array<i32>} : memref<64x16xf32, #tpu.memory_space<vmem>>, vector<48x16xf32>,
    %c6 = arith.constant 6 : index
    %c0_44 = arith.constant 0 : index
    %72 = vector.load %arg10[%c6, %c0_44] : memref<64x16xf32, #tpu.memory_space<vmem>>, vector<48x16xf32>
    %73 = arith.truncf %72 : vector<48x16xf32> to vector<48x16xbf16>
    %c1_45 = arith.constant 1 : index
    %c0_46 = arith.constant 0 : index
    %c0_47 = arith.constant 0 : index
    %c0_48 = arith.constant 0 : index
    %74 = vector.load %arg5[%c1_45, %c0_46, %c0_47, %c0_48] : memref<3x3x16x32xbf16, #tpu.memory_space<vmem>>, vector<1x1x16x32xbf16>
    %75 = vector.shape_cast %74 : vector<1x1x16x32xbf16> to vector<16x32xbf16>
    %cst_49 = arith.constant dense<0.000000e+00> : vector<48x32xf32>
    %76 = tpu.matmul %73, %75, %cst_49 {dimension_numbers = #tpu.dot_dimension_numbers<[1], [0], [0], [1], [0, 0, 1, 1], [], []>} : vector<48x16xbf16>, vector<16x32xbf16>, vector<48x32xf32> -> vector<48x32xf32>
    %c8_50 = arith.constant 8 : index
    %c0_51 = arith.constant 0 : index
    %77 = vector.load %arg10[%c8_50, %c0_51] : memref<64x16xf32, #tpu.memory_space<vmem>>, vector<48x16xf32>
    %78 = arith.truncf %77 : vector<48x16xf32> to vector<48x16xbf16>
    %c1_52 = arith.constant 1 : index
    %c1_53 = arith.constant 1 : index
    %c0_54 = arith.constant 0 : index
    %c0_55 = arith.constant 0 : index
    %79 = vector.load %arg5[%c1_52, %c1_53, %c0_54, %c0_55] : memref<3x3x16x32xbf16, #tpu.memory_space<vmem>>, vector<1x1x16x32xbf16>
    %80 = vector.shape_cast %79 : vector<1x1x16x32xbf16> to vector<16x32xbf16>
    %cst_56 = arith.constant dense<0.000000e+00> : vector<48x32xf32>
    %81 = tpu.matmul %78, %80, %cst_56 {dimension_numbers = #tpu.dot_dimension_numbers<[1], [0], [0], [1], [0, 0, 1, 1], [], []>} : vector<48x16xbf16>, vector<16x32xbf16>, vector<48x32xf32> -> vector<48x32xf32>
    %82 = arith.addf %76, %81 : vector<48x32xf32>
    %c10 = arith.constant 10 : index
    %c0_57 = arith.constant 0 : index
    %83 = vector.load %arg10[%c10, %c0_57] : memref<64x16xf32, #tpu.memory_space<vmem>>, vector<48x16xf32>
    %84 = arith.truncf %83 : vector<48x16xf32> to vector<48x16xbf16>
    %c1_58 = arith.constant 1 : index
    %c2_59 = arith.constant 2 : index
    %c0_60 = arith.constant 0 : index
    %c0_61 = arith.constant 0 : index
    %85 = vector.load %arg5[%c1_58, %c2_59, %c0_60, %c0_61] : memref<3x3x16x32xbf16, #tpu.memory_space<vmem>>, vector<1x1x16x32xbf16>
    %86 = vector.shape_cast %85 : vector<1x1x16x32xbf16> to vector<16x32xbf16>
    %cst_62 = arith.constant dense<0.000000e+00> : vector<48x32xf32>
    %87 = tpu.matmul %84, %86, %cst_62 {dimension_numbers = #tpu.dot_dimension_numbers<[1], [0], [0], [1], [0, 0, 1, 1], [], []>} : vector<48x16xbf16>, vector<16x32xbf16>, vector<48x32xf32> -> vector<48x32xf32>
    %88 = arith.addf %82, %87 : vector<48x32xf32>
    %c1_63 = arith.constant 1 : index
    %c0_64 = arith.constant 0 : index
    %c0_65 = arith.constant 0 : index
    %89 = vector.load %arg6[%c1_63, %c0_64, %c0_65] : memref<3x1x32xf32, #tpu.memory_space<vmem>>, vector<1x1x32xf32>
    %90 = vector.shape_cast %89 : vector<1x1x32xf32> to vector<1x32xf32>
    %91 = vector.broadcast %90 : vector<1x32xf32> to vector<48x32xf32>
    %92 = arith.addf %88, %91 : vector<48x32xf32>
    %93 = vector.extract_strided_slice %92 {offsets = [0, 0], sizes = [48, 16], strides = [1, 1]} : vector<48x32xf32> to vector<48x16xf32>
    %94 = math.tanh %93 : vector<48x16xf32>
    %95 = vector.extract_strided_slice %92 {offsets = [0, 16], sizes = [48, 16], strides = [1, 1]} : vector<48x32xf32> to vector<48x16xf32>
    %96 = arith.negf %95 : vector<48x16xf32>
    %97 = math.exp %96 : vector<48x16xf32>
    %cst_66 = arith.constant 1.000000e+00 : f32
    %98 = vector.broadcast %cst_66 : f32 to vector<48x16xf32>
    %99 = arith.addf %98, %97 : vector<48x16xf32>
    %100 = arith.divf %98, %99 : vector<48x16xf32>
    %101 = arith.mulf %94, %100 : vector<48x16xf32>
    %102 = arith.truncf %101 : vector<48x16xf32> to vector<48x16xbf16>
    %c1_67 = arith.constant 1 : index
    %c0_68 = arith.constant 0 : index
    %c0_69 = arith.constant 0 : index
    %103 = vector.load %arg7[%c1_67, %c0_68, %c0_69] : memref<3x16x16xbf16, #tpu.memory_space<vmem>>, vector<1x16x16xbf16>
    %104 = vector.shape_cast %103 : vector<1x16x16xbf16> to vector<16x16xbf16>
    %cst_70 = arith.constant dense<0.000000e+00> : vector<48x16xf32>
    %105 = tpu.matmul %102, %104, %cst_70 {dimension_numbers = #tpu.dot_dimension_numbers<[1], [0], [0], [1], [0, 0, 1, 1], [], []>} : vector<48x16xbf16>, vector<16x16xbf16>, vector<48x16xf32> -> vector<48x16xf32>
    %c1_71 = arith.constant 1 : index
    %c0_72 = arith.constant 0 : index
    %c0_73 = arith.constant 0 : index
    %106 = vector.load %arg8[%c1_71, %c0_72, %c0_73] : memref<3x1x16xf32, #tpu.memory_space<vmem>>, vector<1x1x16xf32>
    %107 = vector.shape_cast %106 : vector<1x1x16xf32> to vector<1x16xf32>
    %108 = vector.broadcast %107 : vector<1x16xf32> to vector<48x16xf32>
    %109 = arith.addf %105, %108 : vector<48x16xf32>
    %110 = vector.extract_strided_slice %109 {offsets = [8, 0], sizes = [32, 16], strides = [1, 1]} : vector<48x16xf32> to vector<32x16xf32>
    %111 = arith.addf %66, %110 : vector<32x16xf32>
    %cst_74 = arith.constant 0.000000e+00 : f32
    %112 = vector.shape_cast %9 : vector<48x1xi1> to vector<48x1xi1>
    %113 = vector.broadcast %112 : vector<48x1xi1> to vector<48x16xi1>
    %114 = vector.broadcast %cst_74 : f32 to vector<48x16xf32>
    %115 = arith.select %113, %109, %114 : vector<48x16xi1>, vector<48x16xf32>
    %c8_75 = arith.constant 8 : index
    %c0_76 = arith.constant 0 : index
    %116 = vector.load %arg10[%c8_75, %c0_76] : memref<64x16xf32, #tpu.memory_space<vmem>>, vector<48x16xf32>
    tpu.vector_store %arg10[%c8_75, %c0_76], %115 {strides = array<i32>} : memref<64x16xf32, #tpu.memory_space<vmem>>, vector<48x16xf32>,
    %c4 = arith.constant 4 : index
    %c0_77 = arith.constant 0 : index
    %117 = vector.load %arg10[%c4, %c0_77] : memref<64x16xf32, #tpu.memory_space<vmem>>, vector<48x16xf32>
    %118 = arith.truncf %117 : vector<48x16xf32> to vector<48x16xbf16>
    %c2_78 = arith.constant 2 : index
    %c0_79 = arith.constant 0 : index
    %c0_80 = arith.constant 0 : index
    %c0_81 = arith.constant 0 : index
    %119 = vector.load %arg5[%c2_78, %c0_79, %c0_80, %c0_81] : memref<3x3x16x32xbf16, #tpu.memory_space<vmem>>, vector<1x1x16x32xbf16>
    %120 = vector.shape_cast %119 : vector<1x1x16x32xbf16> to vector<16x32xbf16>
    %cst_82 = arith.constant dense<0.000000e+00> : vector<48x32xf32>
    %121 = tpu.matmul %118, %120, %cst_82 {dimension_numbers = #tpu.dot_dimension_numbers<[1], [0], [0], [1], [0, 0, 1, 1], [], []>} : vector<48x16xbf16>, vector<16x32xbf16>, vector<48x32xf32> -> vector<48x32xf32>
    %c8_83 = arith.constant 8 : index
    %c0_84 = arith.constant 0 : index
    %122 = vector.load %arg10[%c8_83, %c0_84] : memref<64x16xf32, #tpu.memory_space<vmem>>, vector<48x16xf32>
    %123 = arith.truncf %122 : vector<48x16xf32> to vector<48x16xbf16>
    %c2_85 = arith.constant 2 : index
    %c1_86 = arith.constant 1 : index
    %c0_87 = arith.constant 0 : index
    %c0_88 = arith.constant 0 : index
    %124 = vector.load %arg5[%c2_85, %c1_86, %c0_87, %c0_88] : memref<3x3x16x32xbf16, #tpu.memory_space<vmem>>, vector<1x1x16x32xbf16>
    %125 = vector.shape_cast %124 : vector<1x1x16x32xbf16> to vector<16x32xbf16>
    %cst_89 = arith.constant dense<0.000000e+00> : vector<48x32xf32>
    %126 = tpu.matmul %123, %125, %cst_89 {dimension_numbers = #tpu.dot_dimension_numbers<[1], [0], [0], [1], [0, 0, 1, 1], [], []>} : vector<48x16xbf16>, vector<16x32xbf16>, vector<48x32xf32> -> vector<48x32xf32>
    %127 = arith.addf %121, %126 : vector<48x32xf32>
    %c12 = arith.constant 12 : index
    %c0_90 = arith.constant 0 : index
    %128 = vector.load %arg10[%c12, %c0_90] : memref<64x16xf32, #tpu.memory_space<vmem>>, vector<48x16xf32>
    %129 = arith.truncf %128 : vector<48x16xf32> to vector<48x16xbf16>
    %c2_91 = arith.constant 2 : index
    %c2_92 = arith.constant 2 : index
    %c0_93 = arith.constant 0 : index
    %c0_94 = arith.constant 0 : index
    %130 = vector.load %arg5[%c2_91, %c2_92, %c0_93, %c0_94] : memref<3x3x16x32xbf16, #tpu.memory_space<vmem>>, vector<1x1x16x32xbf16>
    %131 = vector.shape_cast %130 : vector<1x1x16x32xbf16> to vector<16x32xbf16>
    %cst_95 = arith.constant dense<0.000000e+00> : vector<48x32xf32>
    %132 = tpu.matmul %129, %131, %cst_95 {dimension_numbers = #tpu.dot_dimension_numbers<[1], [0], [0], [1], [0, 0, 1, 1], [], []>} : vector<48x16xbf16>, vector<16x32xbf16>, vector<48x32xf32> -> vector<48x32xf32>
    %133 = arith.addf %127, %132 : vector<48x32xf32>
    %c2_96 = arith.constant 2 : index
    %c0_97 = arith.constant 0 : index
    %c0_98 = arith.constant 0 : index
    %134 = vector.load %arg6[%c2_96, %c0_97, %c0_98] : memref<3x1x32xf32, #tpu.memory_space<vmem>>, vector<1x1x32xf32>
    %135 = vector.shape_cast %134 : vector<1x1x32xf32> to vector<1x32xf32>
    %136 = vector.broadcast %135 : vector<1x32xf32> to vector<48x32xf32>
    %137 = arith.addf %133, %136 : vector<48x32xf32>
    %138 = vector.extract_strided_slice %137 {offsets = [0, 0], sizes = [48, 16], strides = [1, 1]} : vector<48x32xf32> to vector<48x16xf32>
    %139 = math.tanh %138 : vector<48x16xf32>
    %140 = vector.extract_strided_slice %137 {offsets = [0, 16], sizes = [48, 16], strides = [1, 1]} : vector<48x32xf32> to vector<48x16xf32>
    %141 = arith.negf %140 : vector<48x16xf32>
    %142 = math.exp %141 : vector<48x16xf32>
    %cst_99 = arith.constant 1.000000e+00 : f32
    %143 = vector.broadcast %cst_99 : f32 to vector<48x16xf32>
    %144 = arith.addf %143, %142 : vector<48x16xf32>
    %145 = arith.divf %143, %144 : vector<48x16xf32>
    %146 = arith.mulf %139, %145 : vector<48x16xf32>
    %147 = arith.truncf %146 : vector<48x16xf32> to vector<48x16xbf16>
    %c2_100 = arith.constant 2 : index
    %c0_101 = arith.constant 0 : index
    %c0_102 = arith.constant 0 : index
    %148 = vector.load %arg7[%c2_100, %c0_101, %c0_102] : memref<3x16x16xbf16, #tpu.memory_space<vmem>>, vector<1x16x16xbf16>
    %149 = vector.shape_cast %148 : vector<1x16x16xbf16> to vector<16x16xbf16>
    %cst_103 = arith.constant dense<0.000000e+00> : vector<48x16xf32>
    %150 = tpu.matmul %147, %149, %cst_103 {dimension_numbers = #tpu.dot_dimension_numbers<[1], [0], [0], [1], [0, 0, 1, 1], [], []>} : vector<48x16xbf16>, vector<16x16xbf16>, vector<48x16xf32> -> vector<48x16xf32>
    %c2_104 = arith.constant 2 : index
    %c0_105 = arith.constant 0 : index
    %c0_106 = arith.constant 0 : index
    %151 = vector.load %arg8[%c2_104, %c0_105, %c0_106] : memref<3x1x16xf32, #tpu.memory_space<vmem>>, vector<1x1x16xf32>
    %152 = vector.shape_cast %151 : vector<1x1x16xf32> to vector<1x16xf32>
    %153 = vector.broadcast %152 : vector<1x16xf32> to vector<48x16xf32>
    %154 = arith.addf %150, %153 : vector<48x16xf32>
    %155 = vector.extract_strided_slice %154 {offsets = [8, 0], sizes = [32, 16], strides = [1, 1]} : vector<48x16xf32> to vector<32x16xf32>
    %156 = arith.addf %111, %155 : vector<32x16xf32>
    %c0_107 = arith.constant 0 : index
    %c0_108 = arith.constant 0 : index
    %c0_109 = arith.constant 0 : index
    %c0_110 = arith.constant 0 : index
    %157 = vector.load %arg9[%c0_107, %c0_108, %c0_109, %c0_110] : memref<1x1x32x16xf32, #tpu.memory_space<vmem>>, vector<1x1x32x16xf32>
    %158 = vector.shape_cast %157 : vector<1x1x32x16xf32> to vector<32x16xf32>
    %159 = vector.shape_cast %156 : vector<32x16xf32> to vector<1x1x32x16xf32>
    tpu.vector_store %arg9[%c0_107, %c0_108, %c0_109, %c0_110], %159 {strides = array<i32>} : memref<1x1x32x16xf32, #tpu.memory_space<vmem>>, vector<1x1x32x16xf32>,
    return
  }
  func.func @transform_0(%arg0: i32, %arg1: i32) -> (i32, i32, i32, i32) {
    %c0_i32 = arith.constant 0 : i32
    %c0_i32_0 = arith.constant 0 : i32
    %c0_i32_1 = arith.constant 0 : i32
    return %arg0, %arg1, %c0_i32, %c0_i32_0 : i32, i32, i32, i32
  }
  func.func @transform_1(%arg0: i32, %arg1: i32) -> (i32, i32) {
    %c0_i32 = arith.constant 0 : i32
    %c0_i32_0 = arith.constant 0 : i32
    %c0_i32_1 = arith.constant 0 : i32
    return %c0_i32, %c0_i32_0 : i32, i32
  }
  func.func @transform_2(%arg0: i32, %arg1: i32) -> (i32, i32) {
    %c0_i32 = arith.constant 0 : i32
    %c0_i32_0 = arith.constant 0 : i32
    %c0_i32_1 = arith.constant 0 : i32
    return %c0_i32, %c0_i32_0 : i32, i32
  }
  func.func @transform_3(%arg0: i32, %arg1: i32) -> (i32, i32, i32, i32) {
    %c0_i32 = arith.constant 0 : i32
    %c0_i32_0 = arith.constant 0 : i32
    %c0_i32_1 = arith.constant 0 : i32
    %c0_i32_2 = arith.constant 0 : i32
    %c0_i32_3 = arith.constant 0 : i32
    return %c0_i32, %c0_i32_0, %c0_i32_1, %c0_i32_2 : i32, i32, i32, i32
  }
  func.func @transform_4(%arg0: i32, %arg1: i32) -> (i32, i32, i32) {
    %c0_i32 = arith.constant 0 : i32
    %c0_i32_0 = arith.constant 0 : i32
    %c0_i32_1 = arith.constant 0 : i32
    %c0_i32_2 = arith.constant 0 : i32
    return %c0_i32, %c0_i32_0, %c0_i32_1 : i32, i32, i32
  }
  func.func @transform_5(%arg0: i32, %arg1: i32) -> (i32, i32, i32) {
    %c0_i32 = arith.constant 0 : i32
    %c0_i32_0 = arith.constant 0 : i32
    %c0_i32_1 = arith.constant 0 : i32
    %c0_i32_2 = arith.constant 0 : i32
    return %c0_i32, %c0_i32_0, %c0_i32_1 : i32, i32, i32
  }
  func.func @transform_6(%arg0: i32, %arg1: i32) -> (i32, i32, i32) {
    %c0_i32 = arith.constant 0 : i32
    %c0_i32_0 = arith.constant 0 : i32
    %c0_i32_1 = arith.constant 0 : i32
    %c0_i32_2 = arith.constant 0 : i32
    return %c0_i32, %c0_i32_0, %c0_i32_1 : i32, i32, i32
  }
  func.func @transform_7(%arg0: i32, %arg1: i32) -> (i32, i32, i32, i32) {
    %c0_i32 = arith.constant 0 : i32
    %c0_i32_0 = arith.constant 0 : i32
    %c0_i32_1 = arith.constant 0 : i32
    return %arg0, %arg1, %c0_i32, %c0_i32_0 : i32, i32, i32, i32
  }
}

</mosaic_0001>

<bundles_post_ra>
// kernel: tpu_custom_call.1
= control target key start
LH: loop header
LB: loop body
LE: loop exit
PB: predicated region body
PF: predicated region fallthrough
CT: control target
= control target key end

     0   :  { %s2065_s24 = smov 0   ;;  %s2067_s25 = smov 0   ;;  %s2467_s0 = inlined_call_operand.vmem [shape: f32[2,3,48,4], index: 0, kind: input, shape index: {}]   ;;  %s2468_s1 = inlined_call_operand.vmem [shape: bf16[4,16], index: 1, kind: input, shape index: {}]   ;;  %s2469_s2 = inlined_call_operand.vmem [shape: f32[1,16], index: 2, kind: input, shape index: {}]   ;;  %s2470_s3 = inlined_call_operand.vmem [shape: bf16[3,3,16,32], index: 3, kind: input, shape index: {}]   ;;  %s2471_s4 = inlined_call_operand.vmem [shape: f32[3,1,32], index: 4, kind: input, shape index: {}]   ;;  %s2472_s5 = inlined_call_operand.vmem [shape: bf16[3,16,16], index: 5, kind: input, shape index: {}]   ;;  %s2473_s6 = inlined_call_operand.vmem [shape: f32[3,1,16], index: 6, kind: input, shape index: {}]   ;;  %s2474_s7 = inlined_call_operand.vmem [shape: f32[2,3,32,16], index: 7, kind: output, shape index: {}]  }
   0x1   :  { %s2069_s26 = smov 0   ;;  %s2071_s27 = smov 0  }
   0x2   :  { %s2073_s28 = smov 0  }
   0x3 LB: > { %s26_s29 = sadd.s32 1, %s2013_s26  ;;  %s29_s30 = sadd.s32 1, %s2017_s27  ;;  %s2021_s28 = sphi %s2073_s28, %s17_s28   ;;  %s2017_s27 = sphi %s2071_s27, %s2490_s27   ;;  %s2013_s26 = sphi %s2069_s26, %s2489_s26   ;;  %s2009_s25 = sphi %s2067_s25, %s2488_s25   ;;  %s2005_s24 = sphi %s2065_s24, %s2487_s24  }
   0x4   : > { %p27_p0 = scmp.ge.s32.totalorder %s26_s29, 3  ;;  %p1672_p1 = scmp.ge.s32.totalorder %s2021_s28, 1 }
   0x5   : > { %p257_p2 = scmp.lt.s32.totalorder %s2021_s28, 7 }
   0x6   : > { %s2492_s29 = smov (%p27_p0, %s26_s29), 0  ;;  %s2494_s30 = smov (!%p27_p0, %s29_s30), %s2017_s27 }
   0x7   : > { %p258_p3 = pnand %p1672_p1, %p257_p2  ;;  %p31_p4 = scmp.ge.s32.totalorder %s2494_s30, 2 }
   0x8   : > { %p297_p5 = scmp.lt.s32.totalorder (!%p258_p3), %s2009_s25, 1  ;;  %p299_p6 = scmp.lt.s32.totalorder (!%p258_p3), %s2005_s24, 2 }
   0x9   : > { %s2496_s30 = smov (%p31_p4, %s2494_s30), 0  ;;  %261 = sbr.rel (%p258_p3) target bundleno = 1524 (0x5f4), region = 48 }
   0xa   : > { %s1676_s22 = sshll.u32 (!%p258_p3), %s2005_s24, 5 }
   0xb   : > { %s1677_s9 = sadd.s32 (!%p258_p3), 4294967288, %s1676_s22 }
   0xe   : > { %v362_v0 = vld [vmem:[%s2468_s1] sm:$0x3]  ;;  %vm377_vm0 = vcmask 1041408   ;;  %s2498_s25 = smov (!%p297_p5, %s2009_s25), 1  ;;  %vm367_vm1 = vcmask 31744   ;;  %vm350_vm2 = vcmask 130048   ;;  %v318_v14 = vlaneseq }
   0xf   : > { %v379_v1 = vsel %vm377_vm0, %v362_v0, 0  ;;  %s2104_s10 = scalar_select %p299_p6, %s2005_s24, 2  ;;  %v2023_v11 = vmov 0.0   ;;  %v1809_v12 = vld [vmem:[%s2470_s3] sm:$0xff]  ;;  %v1810_v13 = vld [vmem:[%s2470_s3 + $0x8] sm:$0xff]  ;;  %v1811_v15 = vld [vmem:[%s2470_s3 + $0x10] sm:$0xff]  ;;  %v325_v17 = vstv %s1677_s9 }
  0x10   : > { %388 = vmatpush.bf16.msra.mxu0 %v379_v1  ;;  %1821 = vmatpush.bf16.msra.mxu1 %v379_v1  ;;  %s1824_s11 = smul.u32 18, %s2498_s25  ;;  %351 = vst.msk [vmem:[#allocation2] sm:$0xff] %vm350_vm2, %v2023_v11  ;;  %v319_v16 = vshrl.u32 %v318_v14, 7  ;;  %v1868_v22 = vld [vmem:[%s2469_s2] ss:$0 sm:$0xff] }
  0x11   : > { %1822 = vmatpush.bf16.msra.mxu2 %v379_v1  ;;  %s1823_s12 = smul.u32 6, %s2104_s10  ;;  %352 = vst.msk [vmem:[#allocation2 + $0x38] sm:$0xff] %vm350_vm2, %v2023_v11  ;;  %564 = vmatpush.bf16.msra.mxu3 %v1811_v15 }
  0x12   : > { %v321_v18 = vadd.s32 16, %v319_v16  ;;  %v326_v19 = vadd.s32 %v325_v17, %v319_v16  ;;  %v323_v21 = vadd.s32 32, %v319_v16  ;;  %v320_v23 = vadd.s32 8, %v319_v16 }
  0x13   : > { %s303_s13 = sadd.s32 %s1824_s11, %s1823_s12  ;;  %v322_v24 = vadd.s32 24, %v319_v16  ;;  %v324_v36 = vadd.s32 40, %v319_v16  ;;  %s1674_s11 = sshll.u32 %s2104_s10, 2 }
  0x14   : > { %s1673_s14 = sshll.u32 %s303_s13, 3  ;;  %474 = vmatpush.bf16.msrb.mxu1 %v1810_v13  ;;  %v328_v20 = vadd.s32 %v325_v17, %v321_v18  ;;  %vm332_vm3 = vcmp.ge.s32.totalorder %v326_v19, 0  ;;  %vm338_vm4 = vcmp.lt.s32.totalorder %v326_v19, 80  ;;  %v330_v27 = vadd.s32 %v325_v17, %v323_v21  ;;  %v2192_v21 = vld [vmem:[%s2471_s4] ss:$0 sm:$0xff] }
  0x15   : > { %s305_s17 = scalar_lea.vmem %s2467_s0, %s1673_s14  ;;  %513 = vmatpush.bf16.msrb.mxu2 %v1809_v12  ;;  %vm2126_vm7 = vmand %vm332_vm3, %vm338_vm4  ;;  %v327_v31 = vadd.s32 %v325_v17, %v320_v23  ;;  %v329_v33 = vadd.s32 %v325_v17, %v322_v24  ;;  %v331_v42 = vadd.s32 %v325_v17, %v324_v36  ;;  %s2024_s14 = smov 112  }
  0x16   : > { %v353_v2 = vld [vmem:[%s305_s17] sm:$0xff]  ;;  %v354_v3 = vld [vmem:[%s305_s17 + $0x8] sm:$0xff]  ;;  %v355_v4 = vld [vmem:[%s305_s17 + $0x10] sm:$0xff]  ;;  %vm334_vm5 = vcmp.ge.s32.totalorder %v328_v20, 0  ;;  %vm340_vm6 = vcmp.lt.s32.totalorder %v328_v20, 80  ;;  %vm336_vm9 = vcmp.ge.s32.totalorder %v330_v27, 0 }
  0x17   : > { %v359_v5 = vpack.c.bf16 %v354_v3, %v353_v2  ;;  %v356_v6 = vld [vmem:[%s305_s17 + $0x18] sm:$0xff]  ;;  %v357_v7 = vld [vmem:[%s305_s17 + $0x20] sm:$0xff]  ;;  %v358_v8 = vld [vmem:[%s305_s17 + $0x28] sm:$0xff]  ;;  %vm342_vm10 = vcmp.lt.s32.totalorder %v330_v27, 80  ;;  %vm333_vm11 = vcmp.ge.s32.totalorder %v327_v31, 0  ;;  %vm339_vm12 = vcmp.lt.s32.totalorder %v327_v31, 80 }
  0x18   : > { %v360_v9 = vpack.c.bf16 %v356_v6, %v355_v4  ;;  %v361_v10 = vpack.c.bf16 %v358_v8, %v357_v7  ;;  %vm2130_vm8 = vmand %vm334_vm5, %vm340_vm6  ;;  %vm335_vm13 = vcmp.ge.s32.totalorder %v329_v33, 0  ;;  %vm341_vm14 = vcmp.lt.s32.totalorder %v329_v33, 80 }
  0x19   : > { %1678 = vmatmul.msk.bf16.vlgmr.msra.gmra.mxu0 %vm367_vm1, %v359_v5  ;;  %vm2143_vm15 = vmand %vm336_vm9, %vm342_vm10  ;;  %vm337_vm3 = vcmp.ge.s32.totalorder %v331_v42, 0  ;;  %vm343_vm4 = vcmp.lt.s32.totalorder %v331_v42, 80 }
  0x1a   : > { %1679 = vmatmul.msk.bf16.vlgmr.msra.gmra.mxu1 %vm367_vm1, %v360_v9  ;;  %1680 = vmatmul.msk.bf16.vlgmr.msra.gmra.mxu2 %vm367_vm1, %v361_v10  ;;  %vm2149_vm0 = vmand %vm333_vm11, %vm339_vm12 }
  0x1b   : > { %vm2155_vm1 = vmand %vm335_vm13, %vm341_vm14 }
  0x1c   : > { %vm2173_vm5 = vmand %vm337_vm3, %vm343_vm4 }
  0x96   : > { %v390_v26 = vpop.f32.mrf.mxu0 }
  0x97   : > { %v391_v28 = vadd.f32 %v1868_v22, %v390_v26  ;;  %v395_v30 = vpop.f32.mrf.mxu1 }
  0x98   : > { %v2134_v32 = vadd.f32 %v1868_v22, %v395_v30 }
  0x99   : > { %v417_v34 = vsel %vm2126_vm7, %v391_v28, 0.0 }
  0x9a   : > { %423 = vst.msk [vmem:[#allocation2 + $0x8] sm:$0xff] %vm350_vm2, %v417_v34  ;;  %v419_v35 = vsel %vm2130_vm8, %v2134_v32, 0.0 }
  0x9b   : > { %425 = vst.msk [vmem:[#allocation2 + $0x18] sm:$0xff] %vm350_vm2, %v419_v35 }
  0x9d   : > { %v400_v38 = vpop.f32.mrf.mxu2 }
  0x9e   : > { %v2147_v39 = vadd.f32 %v1868_v22, %v400_v38  ;;  %v392_v41 = vpop.f32.mrf.mxu0 }
  0x9f   : > { %v2153_v43 = vadd.f32 %v1868_v22, %v392_v41  ;;  %v397_v45 = vpop.f32.mrf.mxu1 }
  0xa0   : > { %v421_v46 = vsel %vm2143_vm15, %v2147_v39, 0.0  ;;  %v2162_v47 = vadd.f32 %v1868_v22, %v397_v45 }
  0xa1   : > { %427 = vst.msk [vmem:[#allocation2 + $0x28] sm:$0xff] %vm350_vm2, %v421_v46  ;;  %v418_v48 = vsel %vm2149_vm0, %v2153_v43, 0.0  ;;  %v440_v54 = vld [vmem:[#allocation2 + $0x8] sm:$0xff] }
  0xa2   : > { %424 = vst.msk [vmem:[#allocation2 + $0x10] sm:$0xff] %vm350_vm2, %v418_v48  ;;  %v420_v49 = vsel %vm2155_vm1, %v2162_v47, 0.0  ;;  %v429_v55 = vld [vmem:[#allocation2 + $0x7] sm:$0xff]  ;;  %v442_v63 = vld [vmem:[#allocation2 + $0x18] sm:$0xff] }
  0xa3   : > { %426 = vst.msk [vmem:[#allocation2 + $0x20] sm:$0xff] %vm350_vm2, %v420_v49 }
  0xa5   : > { %v402_v51 = vpop.f32.mrf.mxu2 }
  0xa6   : > { %v403_v52 = vadd.f32 %v1868_v22, %v402_v51 }
  0xa8   : > { %v422_v53 = vsel %vm2173_vm5, %v403_v52, 0.0  ;;  %v444_v8 = vld [vmem:[#allocation2 + $0x28] sm:$0xff] }
  0xa9   : > { %428 = vst.msk [vmem:[#allocation2 + $0x30] sm:$0xff] %vm350_vm2, %v422_v53  ;;  %v441_v56 = vld [vmem:[#allocation2 + $0x10] sm:$0xff] }
  0xaa   : > { %v430_v57 = vld [vmem:[#allocation2 + $0xf] sm:$0xff]  ;;  %v446_v59 = vpack.c.bf16 %v441_v56, %v440_v54  ;;  %v443_v0 = vld [vmem:[#allocation2 + $0x20] sm:$0xff]  ;;  %v431_v1 = vld [vmem:[#allocation2 + $0x17] sm:$0xff] }
  0xab   : > { %v530_v58 = vld [vmem:[#allocation2 + $0x9] sm:$0xff]  ;;  %v435_v60 = vpack.c.bf16 %v430_v57, %v429_v55  ;;  %v531_v61 = vld [vmem:[#allocation2 + $0x11] sm:$0xff]  ;;  %v432_v2 = vld [vmem:[#allocation2 + $0x1f] sm:$0xff]  ;;  %v447_v5 = vpack.c.bf16 %v443_v0, %v442_v63 }
  0xac   : > { %v536_v62 = vpack.c.bf16 %v531_v61, %v530_v58  ;;  %1687 = vmatmul.msk.bf16.vlgmr.msrb.gmra.mxu1 %vm350_vm2, %v446_v59  ;;  %v532_v3 = vld [vmem:[#allocation2 + $0x19] sm:$0xff]  ;;  %v533_v4 = vld [vmem:[#allocation2 + $0x21] sm:$0xff]  ;;  %v436_v6 = vpack.c.bf16 %v432_v2, %v431_v1 }
  0xad   : > { %1694 = vmatmul.msk.bf16.vlgmr.msrb.gmra.mxu2 %vm350_vm2, %v435_v60  ;;  %v537_v7 = vpack.c.bf16 %v533_v4, %v532_v3  ;;  %v433_v13 = vld [vmem:[#allocation2 + $0x27] sm:$0xff] }
  0xae   : > { %1703 = vmatmul.msk.bf16.vlgmr.msra.gmra.mxu3 %vm350_vm2, %v536_v62 }
  0xb0   : > { %v445_v9 = vld [vmem:[#allocation2 + $0x30] sm:$0xff] }
  0xb1   : > { %v434_v10 = vld [vmem:[#allocation2 + $0x2f] sm:$0xff]  ;;  %v448_v14 = vpack.c.bf16 %v445_v9, %v444_v8 }
  0xb2   : > { %v534_v11 = vld [vmem:[#allocation2 + $0x29] sm:$0xff]  ;;  %v535_v12 = vld [vmem:[#allocation2 + $0x31] sm:$0xff]  ;;  %v437_v15 = vpack.c.bf16 %v434_v10, %v433_v13 }
  0xb3   : > { %v538_v16 = vpack.c.bf16 %v535_v12, %v534_v11 }
  0xbc   : > { %1688 = vmatmul.msk.bf16.gmra.mxu1 %vm350_vm2, %v447_v5 }
  0xbd   : > { %1695 = vmatmul.msk.bf16.gmra.mxu2 %vm350_vm2, %v436_v6 }
  0xbe   : > { %1704 = vmatmul.msk.bf16.gmra.mxu3 %vm350_vm2, %v537_v7 }
  0xcc   : > { %1689 = vmatmul.msk.bf16.gmra.mxu1 %vm350_vm2, %v448_v14 }
  0xcd   : > { %1696 = vmatmul.msk.bf16.gmra.mxu2 %vm350_vm2, %v437_v15 }
  0xce   : > { %1705 = vmatmul.msk.bf16.gmra.mxu3 %vm350_vm2, %v538_v16 }
 0x129   : > { %v476_v17 = vpop.f32.mrf.mxu1 }
 0x130   : > { %v515_v18 = vpop.f32.mrf.mxu2 }
 0x131   : > { %v516_v19 = vadd.f32 %v515_v18, %v476_v17  ;;  %v566_v20 = vpop.f32.mrf.mxu3  ;;  %v478_v22 = vpop.f32.mrf.mxu1 }
 0x133   : > { %v581_v23 = vadd.f32 %v566_v20, %v516_v19 }
 0x135   : > { %v2195_v24 = vadd.f32 %v2192_v21, %v581_v23 }
 0x137   : > { %v1706_v26 = vmul.f32 -1.442695, %v2195_v24 }
 0x138   : > { %v517_v27 = vpop.f32.mrf.mxu2 }
 0x139   : > { %1875 = vpow2.f32 %v1706_v26  ;;  %v518_v28 = vadd.f32 %v517_v27, %v478_v22  ;;  %v568_v30 = vpop.f32.mrf.mxu3  ;;  %v481_v31 = vpop.f32.mrf.mxu1 }
 0x13b   : > { %v582_v33 = vadd.f32 %v568_v30, %v518_v28 }
 0x13d   : > { %v2199_v34 = vadd.f32 %v2192_v21, %v582_v33 }
 0x13f   : > { %v1876_v35 = vpop.eup %1875  ;;  %v1707_v36 = vmul.f32 -1.442695, %v2199_v34 }
 0x140   : > { %v621_v38 = vadd.f32 1.0, %v1876_v35  ;;  %v520_v41 = vpop.f32.mrf.mxu2 }
 0x141   : > { %1877 = vpow2.f32 %v1707_v36  ;;  %v521_v42 = vadd.f32 %v520_v41, %v481_v31  ;;  %v571_v45 = vpop.f32.mrf.mxu3  ;;  %v483_v48 = vpop.f32.mrf.mxu1 }
 0x142   : > { %1879 = vrcp.f32 %v621_v38  ;;  %v636_v61 = vand.u32 2147483647, %v621_v38  ;;  %v638_v62 = vand.u32 2147483648, %v621_v38  ;;  %vm632_vm9 = vweird.f32 %v621_v38 }
 0x143   : > { %v583_v46 = vadd.f32 %v571_v45, %v521_v42 }
 0x144   : > { %vm637_vm11 = vcmp.eq.f32.partialorder %v636_v61, 8.507059e+37  ;;  %v639_v8 = vor.u32 1.1754944e-38, %v638_v62 }
 0x145   : > { %v2203_v49 = vadd.f32 %v2192_v21, %v583_v46  ;;  %v1812_v46 = vld [vmem:[%s2472_s5] sm:$0xff] }
 0x146   : > { %778 = vmatpush.bf16.msrb.mxu0 %v1812_v46 }
 0x147   : > { %v1878_v51 = vpop.eup %1877  ;;  %v1708_v52 = vmul.f32 -1.442695, %v2203_v49 }
 0x148   : > { %v1880_v53 = vpop.eup %1879  ;;  %v622_v54 = vadd.f32 1.0, %v1878_v51  ;;  %v522_v55 = vpop.f32.mrf.mxu2 }
 0x149   : > { %1881 = vpow2.f32 %v1708_v52  ;;  %v523_v56 = vadd.f32 %v522_v55, %v483_v48  ;;  %v573_v57 = vpop.f32.mrf.mxu3  ;;  %v628_v58 = vmul.f32 %v1880_v53, %v621_v38  ;;  %vm633_vm6 = vweird.f32 %v1880_v53  ;;  %v486_v1 = vpop.f32.mrf.mxu1 }
 0x14a   : > { %1883 = vrcp.f32 %v622_v54  ;;  %vm634_vm10 = vmor %vm632_vm9, %vm633_vm6  ;;  %v651_v16 = vand.u32 2147483647, %v622_v54  ;;  %v653_v17 = vand.u32 2147483648, %v622_v54  ;;  %vm647_vm13 = vweird.f32 %v622_v54 }
 0x14b   : > { %v584_v59 = vadd.f32 %v573_v57, %v523_v56  ;;  %v629_v60 = vsub.f32 1.0, %v628_v58 }
 0x14c   : > { %vm652_vm3 = vcmp.eq.f32.partialorder %v651_v16, 8.507059e+37  ;;  %v654_v31 = vor.u32 1.1754944e-38, %v653_v17 }
 0x14d   : > { %v2207_v63 = vadd.f32 %v2192_v21, %v584_v59  ;;  %v630_v0 = vmul.f32 %v1880_v53, %v629_v60 }
 0x14f   : > { %v1882_v2 = vpop.eup %1881  ;;  %v1709_v3 = vmul.f32 -1.442695, %v2207_v63  ;;  %v631_v4 = vadd.f32 %v1880_v53, %v630_v0 }
 0x150   : > { %v1884_v5 = vpop.eup %1883  ;;  %v623_v6 = vadd.f32 1.0, %v1882_v2  ;;  %v525_v7 = vpop.f32.mrf.mxu2 }
 0x151   : > { %1885 = vpow2.f32 %v1709_v3  ;;  %v526_v9 = vadd.f32 %v525_v7, %v486_v1  ;;  %v576_v10 = vpop.f32.mrf.mxu3  ;;  %v635_v11 = vsel %vm634_vm10, %v1880_v53, %v631_v4  ;;  %v643_v12 = vmul.f32 %v1884_v5, %v622_v54  ;;  %v488_v28 = vpop.f32.mrf.mxu1 }
 0x152   : > { %1887 = vrcp.f32 %v623_v6  ;;  %v640_v13 = vsel %vm637_vm11, %v639_v8, %v635_v11  ;;  %vm648_vm12 = vweird.f32 %v1884_v5  ;;  %v668_v48 = vand.u32 2147483648, %v623_v6 }
 0x153   : > { %v585_v14 = vadd.f32 %v576_v10, %v526_v9  ;;  %723 = vrot.lane.b32.xlu0 %v640_v13, %s2024_s14  ;;  %v644_v15 = vsub.f32 1.0, %v643_v12  ;;  %vm649_vm14 = vmor %vm647_vm13, %vm648_vm12  ;;  %v666_v53 = vand.u32 2147483647, %v623_v6  ;;  %vm662_vm6 = vweird.f32 %v623_v6 }
 0x154   : > { %v669_v59 = vor.u32 1.1754944e-38, %v668_v48 }
 0x155   : > { %v2212_v18 = vadd.f32 %v2192_v21, %v585_v14  ;;  %v645_v19 = vmul.f32 %v1884_v5, %v644_v15  ;;  %vm667_vm10 = vcmp.eq.f32.partialorder %v666_v53, 8.507059e+37  ;;  %v1813_v53 = vld [vmem:[%s2470_s3 + $0x18] sm:$0xff] }
 0x156   : > { %896 = vmatpush.bf16.msra.mxu2 %v1813_v53 }
 0x157   : > { %v1886_v20 = vpop.eup %1885  ;;  %v1710_v22 = vmul.f32 -1.442695, %v2212_v18  ;;  %v646_v23 = vadd.f32 %v1884_v5, %v645_v19 }
 0x158   : > { %v1888_v26 = vpop.eup %1887  ;;  %v624_v27 = vadd.f32 1.0, %v1886_v20  ;;  %v527_v30 = vpop.f32.mrf.mxu2 }
 0x159   : > { %1889 = vpow2.f32 %v1710_v22  ;;  %v528_v33 = vadd.f32 %v527_v30, %v488_v28  ;;  %v650_v35 = vsel %vm649_vm14, %v1884_v5, %v646_v23  ;;  %v658_v36 = vmul.f32 %v1888_v26, %v623_v6  ;;  %v578_v38 = vpop.f32.mrf.mxu3 }
 0x15a   : > { %1891 = vrcp.f32 %v624_v27  ;;  %v655_v41 = vsel %vm652_vm3, %v654_v31, %v650_v35  ;;  %vm663_vm4 = vweird.f32 %v1888_v26  ;;  %v683_v0 = vand.u32 2147483648, %v624_v27 }
 0x15b   : > { %v586_v42 = vadd.f32 %v578_v38, %v528_v33  ;;  %725 = vrot.lane.b32.xlu0 %v655_v41, %s2024_s14  ;;  %v659_v45 = vsub.f32 1.0, %v658_v36  ;;  %vm664_vm9 = vmor %vm662_vm6, %vm663_vm4  ;;  %v681_v2 = vand.u32 2147483647, %v624_v27  ;;  %vm677_vm12 = vweird.f32 %v624_v27 }
 0x15c   : > { %v684_v7 = vor.u32 1.1754944e-38, %v683_v0 }
 0x15d   : > { %v2220_v51 = vadd.f32 %v2192_v21, %v586_v42  ;;  %v660_v52 = vmul.f32 %v1888_v26, %v659_v45  ;;  %vm682_vm14 = vcmp.eq.f32.partialorder %v681_v2, 8.507059e+37 }
 0x15f   : > { %v1890_v54 = vpop.eup %1889  ;;  %v1711_v55 = vmul.f32 -1.442695, %v2220_v51  ;;  %v661_v56 = vadd.f32 %v1888_v26, %v660_v52 }
 0x160   : > { %v1892_v57 = vpop.eup %1891  ;;  %v625_v58 = vadd.f32 1.0, %v1890_v54 }
 0x161   : > { %1893 = vpow2.f32 %v1711_v55  ;;  %v665_v60 = vsel %vm664_vm9, %v1888_v26, %v661_v56  ;;  %v673_v61 = vmul.f32 %v1892_v57, %v624_v27  ;;  %vm678_vm11 = vweird.f32 %v1892_v57 }
 0x162   : > { %1895 = vrcp.f32 %v625_v58  ;;  %v670_v21 = vsel %vm667_vm10, %v669_v59, %v665_v60  ;;  %vm679_vm13 = vmor %vm677_vm12, %vm678_vm11  ;;  %v698_v12 = vand.u32 2147483648, %v625_v58  ;;  %v696_v14 = vand.u32 2147483647, %v625_v58 }
 0x163   : > { %727 = vrot.lane.b32.xlu1 %v670_v21, %s2024_s14  ;;  %v674_v62 = vsub.f32 1.0, %v673_v61  ;;  %vm692_vm4 = vweird.f32 %v625_v58 }
 0x164   : > { %v699_v17 = vor.u32 1.1754944e-38, %v698_v12  ;;  %vm697_vm9 = vcmp.eq.f32.partialorder %v696_v14, 8.507059e+37 }
 0x165   : > { %v675_v1 = vmul.f32 %v1892_v57, %v674_v62 }
 0x167   : > { %v1894_v3 = vpop.eup %1893  ;;  %v676_v4 = vadd.f32 %v1892_v57, %v675_v1  ;;  %v1870_v1 = vld [vmem:[%s2473_s6] ss:$0 sm:$0xff] }
 0x168   : > { %v1896_v5 = vpop.eup %1895  ;;  %v626_v6 = vadd.f32 1.0, %v1894_v3 }
 0x169   : > { %v680_v8 = vsel %vm679_vm13, %v1892_v57, %v676_v4  ;;  %v688_v9 = vmul.f32 %v1896_v5, %v625_v58  ;;  %vm693_vm3 = vweird.f32 %v1896_v5 }
 0x16a   : > { %1897 = vrcp.f32 %v626_v6  ;;  %v685_v10 = vsel %vm682_vm14, %v684_v7, %v680_v8  ;;  %vm694_vm6 = vmor %vm692_vm4, %vm693_vm3  ;;  %v713_v26 = vand.u32 2147483648, %v626_v6  ;;  %v711_v28 = vand.u32 2147483647, %v626_v6 }
 0x16b   : > { %729 = vrot.lane.b32.xlu1 %v685_v10, %s2024_s14  ;;  %v689_v11 = vsub.f32 1.0, %v688_v9  ;;  %vm707_vm11 = vweird.f32 %v626_v6  ;;  %1899 = vtanh.f32 %v2195_v24  ;;  %v1815_v24 = vld [vmem:[%s2470_s3 + $0x28] sm:$0xff] }
 0x16c   : > { %v714_v31 = vor.u32 1.1754944e-38, %v713_v26  ;;  %vm712_vm13 = vcmp.eq.f32.partialorder %v711_v28, 8.507059e+37  ;;  %1901 = vtanh.f32 %v2199_v34  ;;  %v1814_v34 = vld [vmem:[%s2470_s3 + $0x20] sm:$0xff]  ;;  %947 = vmatpush.bf16.msrb.mxu3 %v1815_v24 }
 0x16d   : > { %v690_v13 = vmul.f32 %v1896_v5, %v689_v11  ;;  %1903 = vtanh.f32 %v2212_v18  ;;  %857 = vmatpush.bf16.msra.mxu1 %v1814_v34 }
 0x16e   : > { %1905 = vtanh.f32 %v2220_v51 }
 0x16f   : > { %v691_v15 = vadd.f32 %v1896_v5, %v690_v13  ;;  %1907 = vtanh.f32 %v2203_v49 }
 0x170   : > { %v1898_v16 = vpop.eup %1897  ;;  %1909 = vtanh.f32 %v2207_v63 }
 0x171   : > { %v695_v19 = vsel %vm694_vm6, %v1896_v5, %v691_v15  ;;  %v703_v20 = vmul.f32 %v1898_v16, %v626_v6  ;;  %vm708_vm10 = vweird.f32 %v1898_v16  ;;  %v1900_v38 = vpop.eup %1899 }
 0x172   : > { %v700_v22 = vsel %vm697_vm9, %v699_v17, %v695_v19  ;;  %vm709_vm12 = vmor %vm707_vm11, %vm708_vm10  ;;  %v1902_v41 = vpop.eup %1901 }
 0x173   : > { %731 = vrot.lane.b32.xlu2 %v700_v22, %s2024_s14  ;;  %v704_v23 = vsub.f32 1.0, %v703_v20  ;;  %v1904_v18 = vpop.eup %1903 }
 0x174   : > { %v1906_v54 = vpop.eup %1905 }
 0x175   : > { %v705_v27 = vmul.f32 %v1898_v16, %v704_v23  ;;  %v1908_v59 = vpop.eup %1907 }
 0x176   : > { %v1910_v60 = vpop.eup %1909 }
 0x177   : > { %v706_v30 = vadd.f32 %v1898_v16, %v705_v27 }
 0x179   : > { %v710_v33 = vsel %vm709_vm12, %v1898_v16, %v706_v30 }
 0x17a   : > { %v715_v35 = vsel %vm712_vm13, %v714_v31, %v710_v33 }
 0x17b   : > { %733 = vrot.lane.b32.xlu2 %v715_v35, %s2024_s14 }
 0x1c5   : > { %v724_v36 = vpop.permute.xlu0 %723 }
 0x1c6   : > { %v741_v46 = vmul.f32 %v1900_v38, %v724_v36 }
 0x1cd   : > { %v732_v42 = vpop.permute.xlu2 %731  ;;  %v726_v45 = vpop.permute.xlu0 %725 }
 0x1ce   : > { %v742_v48 = vmul.f32 %v1902_v41, %v726_v45  ;;  %v745_v56 = vmul.f32 %v1904_v18, %v732_v42 }
 0x1d0   : > { %v747_v52 = vpack.c.bf16 %v742_v48, %v741_v46 }
 0x1d2   : > { %1716 = vmatmul.msk.bf16.vlgmr.msrb.gmra.mxu0 %vm350_vm2, %v747_v52 }
 0x1d5   : > { %v734_v51 = vpop.permute.xlu2 %733  ;;  %v728_v55 = vpop.permute.xlu1 %727 }
 0x1d6   : > { %v746_v57 = vmul.f32 %v1906_v54, %v734_v51  ;;  %v743_v21 = vmul.f32 %v1908_v59, %v728_v55 }
 0x1d8   : > { %v749_v58 = vpack.c.bf16 %v746_v57, %v745_v56 }
 0x1dd   : > { %v730_v61 = vpop.permute.xlu1 %729 }
 0x1de   : > { %v744_v62 = vmul.f32 %v1910_v60, %v730_v61  ;;  %v2290_v61 = vld [vmem:[%s2471_s4 + $0x1] ss:$0 sm:$0xff] }
 0x1e0   : > { %v748_v0 = vpack.c.bf16 %v744_v62, %v743_v21 }
 0x1e2   : > { %1717 = vmatmul.msk.bf16.gmra.mxu0 %vm350_vm2, %v748_v0 }
 0x1f2   : > { %1718 = vmatmul.msk.bf16.gmra.mxu0 %vm350_vm2, %v749_v58 }
 0x24f   : > { %v780_v49 = vpop.f32.mrf.mxu0 }
 0x250   : > { %v781_v2 = vadd.f32 %v1870_v1, %v780_v49 }
 0x252   : > { %v799_v63 = vsel %vm2126_vm7, %v781_v2, 0.0 }
 0x253   : > { %805 = vst.msk [vmem:[#allocation2 + $0x8] sm:$0xff] %vm350_vm2, %v799_v63 }
 0x257   : > { %v782_v3 = vpop.f32.mrf.mxu0 }
 0x258   : > { %v2251_v4 = vadd.f32 %v1870_v1, %v782_v3 }
 0x25a   : > { %v800_v5 = vsel %vm2149_vm0, %v2251_v4, 0.0  ;;  %v823_v8 = vld [vmem:[#allocation2 + $0x8] sm:$0xff] }
 0x25b   : > { %806 = vst.msk [vmem:[#allocation2 + $0x10] sm:$0xff] %vm350_vm2, %v800_v5  ;;  %v811_v11 = vld [vmem:[#allocation2 + $0x6] sm:$0xff] }
 0x25f   : > { %v785_v6 = vpop.f32.mrf.mxu0 }
 0x260   : > { %v2257_v7 = vadd.f32 %v1870_v1, %v785_v6 }
 0x262   : > { %v801_v9 = vsel %vm2130_vm8, %v2257_v7, 0.0  ;;  %v824_v10 = vld [vmem:[#allocation2 + $0x10] sm:$0xff] }
 0x263   : > { %v812_v12 = vld [vmem:[#allocation2 + $0xe] sm:$0xff]  ;;  %807 = vst.msk [vmem:[#allocation2 + $0x18] sm:$0xff] %vm350_vm2, %v801_v9  ;;  %v829_v13 = vpack.c.bf16 %v824_v10, %v823_v8 }
 0x264   : > { %v817_v14 = vpack.c.bf16 %v812_v12, %v811_v11  ;;  %v913_v19 = vld [vmem:[#allocation2 + $0xa] sm:$0xff] }
 0x265   : > { %1727 = vmatmul.msk.bf16.vlgmr.msra.gmra.mxu1 %vm350_vm2, %v829_v13 }
 0x266   : > { %1734 = vmatmul.msk.bf16.vlgmr.msra.gmra.mxu2 %vm350_vm2, %v817_v14 }
 0x267   : > { %v787_v15 = vpop.f32.mrf.mxu0 }
 0x268   : > { %v2265_v16 = vadd.f32 %v1870_v1, %v787_v15 }
 0x26a   : > { %v802_v17 = vsel %vm2155_vm1, %v2265_v16, 0.0  ;;  %v914_v20 = vld [vmem:[#allocation2 + $0x12] sm:$0xff] }
 0x26b   : > { %808 = vst.msk [vmem:[#allocation2 + $0x20] sm:$0xff] %vm350_vm2, %v802_v17  ;;  %v919_v22 = vpack.c.bf16 %v914_v20, %v913_v19  ;;  %v825_v27 = vld [vmem:[#allocation2 + $0x18] sm:$0xff] }
 0x26c   : > { %v813_v31 = vld [vmem:[#allocation2 + $0x16] sm:$0xff] }
 0x26d   : > { %1743 = vmatmul.msk.bf16.vlgmr.msrb.gmra.mxu3 %vm350_vm2, %v919_v22 }
 0x26f   : > { %v790_v23 = vpop.f32.mrf.mxu0 }
 0x270   : > { %v2272_v26 = vadd.f32 %v1870_v1, %v790_v23 }
 0x272   : > { %v803_v28 = vsel %vm2143_vm15, %v2272_v26, 0.0  ;;  %v826_v30 = vld [vmem:[#allocation2 + $0x20] sm:$0xff] }
 0x273   : > { %v814_v33 = vld [vmem:[#allocation2 + $0x1e] sm:$0xff]  ;;  %809 = vst.msk [vmem:[#allocation2 + $0x28] sm:$0xff] %vm350_vm2, %v803_v28  ;;  %v830_v35 = vpack.c.bf16 %v826_v30, %v825_v27 }
 0x274   : > { %v818_v36 = vpack.c.bf16 %v814_v33, %v813_v31  ;;  %v915_v45 = vld [vmem:[#allocation2 + $0x1a] sm:$0xff] }
 0x275   : > { %1728 = vmatmul.msk.bf16.gmra.mxu1 %vm350_vm2, %v830_v35 }
 0x276   : > { %1735 = vmatmul.msk.bf16.gmra.mxu2 %vm350_vm2, %v818_v36 }
 0x277   : > { %v792_v38 = vpop.f32.mrf.mxu0 }
 0x278   : > { %v793_v41 = vadd.f32 %v1870_v1, %v792_v38 }
 0x27a   : > { %v804_v42 = vsel %vm2173_vm5, %v793_v41, 0.0  ;;  %v916_v46 = vld [vmem:[#allocation2 + $0x22] sm:$0xff] }
 0x27b   : > { %810 = vst.msk [vmem:[#allocation2 + $0x30] sm:$0xff] %vm350_vm2, %v804_v42  ;;  %v920_v48 = vpack.c.bf16 %v916_v46, %v915_v45  ;;  %v827_v52 = vld [vmem:[#allocation2 + $0x28] sm:$0xff] }
 0x27c   : > { %v815_v24 = vld [vmem:[#allocation2 + $0x26] sm:$0xff] }
 0x27d   : > { %1744 = vmatmul.msk.bf16.gmra.mxu3 %vm350_vm2, %v920_v48 }
 0x282   : > { %v828_v53 = vld [vmem:[#allocation2 + $0x30] sm:$0xff] }
 0x283   : > { %v816_v34 = vld [vmem:[#allocation2 + $0x2e] sm:$0xff]  ;;  %v831_v18 = vpack.c.bf16 %v828_v53, %v827_v52 }
 0x284   : > { %v819_v54 = vpack.c.bf16 %v816_v34, %v815_v24  ;;  %v917_v51 = vld [vmem:[#allocation2 + $0x2a] sm:$0xff]  ;;  %v918_v55 = vld [vmem:[#allocation2 + $0x32] sm:$0xff] }
 0x285   : > { %1729 = vmatmul.msk.bf16.gmra.mxu1 %vm350_vm2, %v831_v18  ;;  %v921_v56 = vpack.c.bf16 %v918_v55, %v917_v51 }
 0x286   : > { %1736 = vmatmul.msk.bf16.gmra.mxu2 %vm350_vm2, %v819_v54 }
 0x28d   : > { %1745 = vmatmul.msk.bf16.gmra.mxu3 %vm350_vm2, %v921_v56 }
 0x2e2   : > { %v859_v57 = vpop.f32.mrf.mxu1 }
 0x2e9   : > { %v898_v58 = vpop.f32.mrf.mxu2 }
 0x2ea   : > { %v861_v59 = vpop.f32.mrf.mxu1  ;;  %v899_v60 = vadd.f32 %v898_v58, %v859_v57 }
 0x2f0   : > { %v949_v62 = vpop.f32.mrf.mxu3 }
 0x2f1   : > { %v900_v21 = vpop.f32.mrf.mxu2  ;;  %v964_v0 = vadd.f32 %v949_v62, %v899_v60 }
 0x2f2   : > { %v901_v2 = vadd.f32 %v900_v21, %v861_v59  ;;  %v864_v63 = vpop.f32.mrf.mxu1 }
 0x2f3   : > { %v2293_v1 = vadd.f32 %v2290_v61, %v964_v0 }
 0x2f5   : > { %v1747_v49 = vmul.f32 -1.442695, %v2293_v1 }
 0x2f7   : > { %1911 = vpow2.f32 %v1747_v49 }
 0x2f8   : > { %v951_v5 = vpop.f32.mrf.mxu3 }
 0x2f9   : > { %v903_v3 = vpop.f32.mrf.mxu2  ;;  %v965_v6 = vadd.f32 %v951_v5, %v901_v2 }
 0x2fa   : > { %v904_v12 = vadd.f32 %v903_v3, %v864_v63  ;;  %v866_v17 = vpop.f32.mrf.mxu1 }
 0x2fb   : > { %v2297_v8 = vadd.f32 %v2290_v61, %v965_v6 }
 0x2fd   : > { %v1912_v9 = vpop.eup %1911  ;;  %v1748_v10 = vmul.f32 -1.442695, %v2297_v8 }
 0x2fe   : > { %v1005_v11 = vadd.f32 1.0, %v1912_v9 }
 0x2ff   : > { %1913 = vpow2.f32 %v1748_v10 }
 0x300   : > { %1915 = vrcp.f32 %v1005_v11  ;;  %v954_v14 = vpop.f32.mrf.mxu3  ;;  %v1020_v38 = vand.u32 2147483647, %v1005_v11  ;;  %v1022_v41 = vand.u32 2147483648, %v1005_v11  ;;  %vm1016_vm3 = vweird.f32 %v1005_v11 }
 0x301   : > { %v905_v13 = vpop.f32.mrf.mxu2  ;;  %v966_v15 = vadd.f32 %v954_v14, %v904_v12 }
 0x302   : > { %v906_v28 = vadd.f32 %v905_v13, %v866_v17  ;;  %v869_v46 = vpop.f32.mrf.mxu1  ;;  %vm1021_vm6 = vcmp.eq.f32.partialorder %v1020_v38, 8.507059e+37  ;;  %v1023_v18 = vor.u32 1.1754944e-38, %v1022_v41 }
 0x303   : > { %v2301_v19 = vadd.f32 %v2290_v61, %v966_v15 }
 0x305   : > { %v1914_v20 = vpop.eup %1913  ;;  %v1749_v22 = vmul.f32 -1.442695, %v2301_v19 }
 0x306   : > { %v1916_v23 = vpop.eup %1915  ;;  %v1006_v27 = vadd.f32 1.0, %v1914_v20 }
 0x307   : > { %1917 = vpow2.f32 %v1749_v22  ;;  %v1012_v30 = vmul.f32 %v1916_v23, %v1005_v11  ;;  %vm1017_vm14 = vweird.f32 %v1916_v23  ;;  %v1816_v22 = vld [vmem:[%s2472_s5 + $0x8] sm:$0xff] }
 0x308   : > { %1919 = vrcp.f32 %v1006_v27  ;;  %v956_v31 = vpop.f32.mrf.mxu3  ;;  %vm1018_vm4 = vmor %vm1016_vm3, %vm1017_vm14  ;;  %v1035_v60 = vand.u32 2147483647, %v1006_v27  ;;  %v1037_v21 = vand.u32 2147483648, %v1006_v27  ;;  %vm1031_vm10 = vweird.f32 %v1006_v27  ;;  %1164 = vmatpush.bf16.msra.mxu0 %v1816_v22 }
 0x309   : > { %v967_v33 = vadd.f32 %v956_v31, %v906_v28  ;;  %v1013_v35 = vsub.f32 1.0, %v1012_v30  ;;  %v908_v36 = vpop.f32.mrf.mxu2 }
 0x30a   : > { %v909_v54 = vadd.f32 %v908_v36, %v869_v46  ;;  %v871_v9 = vpop.f32.mrf.mxu1  ;;  %vm1036_vm12 = vcmp.eq.f32.partialorder %v1035_v60, 8.507059e+37  ;;  %v1038_v10 = vor.u32 1.1754944e-38, %v1037_v21 }
 0x30b   : > { %v2305_v42 = vadd.f32 %v2290_v61, %v967_v33  ;;  %v1014_v45 = vmul.f32 %v1916_v23, %v1013_v35 }
 0x30d   : > { %v1918_v48 = vpop.eup %1917  ;;  %v1750_v52 = vmul.f32 -1.442695, %v2305_v42  ;;  %v1015_v53 = vadd.f32 %v1916_v23, %v1014_v45 }
 0x30e   : > { %v1920_v24 = vpop.eup %1919  ;;  %v1007_v34 = vadd.f32 1.0, %v1918_v48 }
 0x30f   : > { %1921 = vpow2.f32 %v1750_v52  ;;  %v1019_v51 = vsel %vm1018_vm4, %v1916_v23, %v1015_v53  ;;  %v1027_v55 = vmul.f32 %v1920_v24, %v1006_v27  ;;  %vm1032_vm9 = vweird.f32 %v1920_v24 }
 0x310   : > { %1923 = vrcp.f32 %v1007_v34  ;;  %v959_v56 = vpop.f32.mrf.mxu3  ;;  %v1024_v57 = vsel %vm1021_vm6, %v1023_v18, %v1019_v51  ;;  %vm1033_vm11 = vmor %vm1031_vm10, %vm1032_vm9  ;;  %v1052_v23 = vand.u32 2147483648, %v1007_v34  ;;  %v1050_v30 = vand.u32 2147483647, %v1007_v34 }
 0x311   : > { %v968_v58 = vadd.f32 %v959_v56, %v909_v54  ;;  %1107 = vrot.lane.b32.xlu0 %v1024_v57, %s2024_s14  ;;  %v1028_v59 = vsub.f32 1.0, %v1027_v55  ;;  %v910_v49 = vpop.f32.mrf.mxu2  ;;  %vm1046_vm14 = vweird.f32 %v1007_v34 }
 0x312   : > { %v911_v11 = vadd.f32 %v910_v49, %v871_v9  ;;  %v1053_v41 = vor.u32 1.1754944e-38, %v1052_v23  ;;  %vm1051_vm4 = vcmp.eq.f32.partialorder %v1050_v30, 8.507059e+37 }
 0x313   : > { %v2310_v62 = vadd.f32 %v2290_v61, %v968_v58  ;;  %v1029_v0 = vmul.f32 %v1920_v24, %v1028_v59 }
 0x315   : > { %v1922_v2 = vpop.eup %1921  ;;  %v1751_v63 = vmul.f32 -1.442695, %v2310_v62  ;;  %v1030_v3 = vadd.f32 %v1920_v24, %v1029_v0 }
 0x316   : > { %v1924_v5 = vpop.eup %1923  ;;  %v1008_v6 = vadd.f32 1.0, %v1922_v2 }
 0x317   : > { %1925 = vpow2.f32 %v1751_v63  ;;  %v1034_v12 = vsel %vm1033_vm11, %v1920_v24, %v1030_v3  ;;  %v1042_v13 = vmul.f32 %v1924_v5, %v1007_v34  ;;  %vm1047_vm13 = vweird.f32 %v1924_v5 }
 0x318   : > { %1927 = vrcp.f32 %v1008_v6  ;;  %v961_v14 = vpop.f32.mrf.mxu3  ;;  %v1039_v15 = vsel %vm1036_vm12, %v1038_v10, %v1034_v12  ;;  %vm1048_vm3 = vmor %vm1046_vm14, %vm1047_vm13  ;;  %v1067_v52 = vand.u32 2147483648, %v1008_v6  ;;  %v1065_v24 = vand.u32 2147483647, %v1008_v6 }
 0x319   : > { %v969_v17 = vadd.f32 %v961_v14, %v911_v11  ;;  %1109 = vrot.lane.b32.xlu1 %v1039_v15, %s2024_s14  ;;  %v1043_v20 = vsub.f32 1.0, %v1042_v13  ;;  %vm1061_vm9 = vweird.f32 %v1008_v6 }
 0x31a   : > { %v1068_v55 = vor.u32 1.1754944e-38, %v1067_v52  ;;  %vm1066_vm11 = vcmp.eq.f32.partialorder %v1065_v24, 8.507059e+37 }
 0x31b   : > { %v2318_v27 = vadd.f32 %v2290_v61, %v969_v17  ;;  %v1044_v28 = vmul.f32 %v1924_v5, %v1043_v20 }
 0x31d   : > { %v1926_v31 = vpop.eup %1925  ;;  %v1752_v33 = vmul.f32 -1.442695, %v2318_v27  ;;  %v1045_v35 = vadd.f32 %v1924_v5, %v1044_v28 }
 0x31e   : > { %v1928_v36 = vpop.eup %1927  ;;  %v1009_v38 = vadd.f32 1.0, %v1926_v31 }
 0x31f   : > { %1929 = vpow2.f32 %v1752_v33  ;;  %v1049_v45 = vsel %vm1048_vm3, %v1924_v5, %v1045_v35  ;;  %v1057_v46 = vmul.f32 %v1928_v36, %v1008_v6  ;;  %vm1062_vm6 = vweird.f32 %v1928_v36  ;;  %v1817_v35 = vld [vmem:[%s2470_s3 + $0x30] sm:$0xff] }
 0x320   : > { %1931 = vrcp.f32 %v1009_v38  ;;  %v1054_v61 = vsel %vm1051_vm4, %v1053_v41, %v1049_v45  ;;  %vm1063_vm10 = vmor %vm1061_vm9, %vm1062_vm6  ;;  %v1082_v60 = vand.u32 2147483648, %v1009_v38  ;;  %v1080_v0 = vand.u32 2147483647, %v1009_v38  ;;  %1282 = vmatpush.bf16.msrb.mxu2 %v1817_v35 }
 0x321   : > { %1111 = vrot.lane.b32.xlu2 %v1054_v61, %s2024_s14  ;;  %v1058_v48 = vsub.f32 1.0, %v1057_v46  ;;  %vm1076_vm13 = vweird.f32 %v1009_v38 }
 0x322   : > { %v1083_v63 = vor.u32 1.1754944e-38, %v1082_v60  ;;  %vm1081_vm3 = vcmp.eq.f32.partialorder %v1080_v0, 8.507059e+37 }
 0x323   : > { %v1059_v53 = vmul.f32 %v1928_v36, %v1058_v48 }
 0x325   : > { %v1930_v18 = vpop.eup %1929  ;;  %v1060_v54 = vadd.f32 %v1928_v36, %v1059_v53 }
 0x326   : > { %v1932_v34 = vpop.eup %1931  ;;  %v1010_v51 = vadd.f32 1.0, %v1930_v18 }
 0x327   : > { %v1064_v56 = vsel %vm1063_vm10, %v1928_v36, %v1060_v54  ;;  %v1072_v57 = vmul.f32 %v1932_v34, %v1009_v38  ;;  %vm1077_vm12 = vweird.f32 %v1932_v34  ;;  %v1819_v36 = vld [vmem:[%s2470_s3 + $0x40] sm:$0xff] }
 0x328   : > { %1933 = vrcp.f32 %v1010_v51  ;;  %v1069_v58 = vsel %vm1066_vm11, %v1068_v55, %v1064_v56  ;;  %vm1078_vm14 = vmor %vm1076_vm13, %vm1077_vm12  ;;  %v1097_v10 = vand.u32 2147483648, %v1010_v51  ;;  %v1095_v12 = vand.u32 2147483647, %v1010_v51  ;;  %1333 = vmatpush.bf16.msra.mxu3 %v1819_v36 }
 0x329   : > { %1113 = vrot.lane.b32.xlu0 %v1069_v58, %s2024_s14  ;;  %v1073_v59 = vsub.f32 1.0, %v1072_v57  ;;  %vm1091_vm6 = vweird.f32 %v1010_v51  ;;  %1935 = vtanh.f32 %v2293_v1  ;;  %v1818_v1 = vld [vmem:[%s2470_s3 + $0x38] sm:$0xff]  ;;  %v795_v56 = vadd.f32 %v2251_v4, %v2153_v43 }
 0x32a   : > { %v1098_v14 = vor.u32 1.1754944e-38, %v1097_v10  ;;  %vm1096_vm10 = vcmp.eq.f32.partialorder %v1095_v12, 8.507059e+37  ;;  %1937 = vtanh.f32 %v2297_v8  ;;  %1243 = vmatpush.bf16.msrb.mxu1 %v1818_v1  ;;  %v798_v12 = vadd.f32 %v2272_v26, %v2147_v39 }
 0x32b   : > { %v1074_v21 = vmul.f32 %v1932_v34, %v1073_v59  ;;  %1939 = vtanh.f32 %v2301_v19 }
 0x32c   : > { %1941 = vtanh.f32 %v2305_v42 }
 0x32d   : > { %v1075_v49 = vadd.f32 %v1932_v34, %v1074_v21  ;;  %1943 = vtanh.f32 %v2310_v62  ;;  %v1872_v62 = vld [vmem:[%s2473_s6 + $0x1] ss:$0 sm:$0xff]  ;;  %v796_v21 = vadd.f32 %v2257_v7, %v2134_v32  ;;  %v797_v32 = vadd.f32 %v2265_v16, %v2162_v47 }
 0x32e   : > { %v1934_v2 = vpop.eup %1933  ;;  %1945 = vtanh.f32 %v2318_v27 }
 0x32f   : > { %v1079_v3 = vsel %vm1078_vm14, %v1932_v34, %v1075_v49  ;;  %v1087_v5 = vmul.f32 %v1934_v2, %v1010_v51  ;;  %vm1092_vm4 = vweird.f32 %v1934_v2  ;;  %v1936_v22 = vpop.eup %1935 }
 0x330   : > { %v1084_v6 = vsel %vm1081_vm3, %v1083_v63, %v1079_v3  ;;  %vm1093_vm9 = vmor %vm1091_vm6, %vm1092_vm4  ;;  %v1938_v23 = vpop.eup %1937 }
 0x331   : > { %1115 = vrot.lane.b32.xlu1 %v1084_v6, %s2024_s14  ;;  %v1088_v9 = vsub.f32 1.0, %v1087_v5  ;;  %v1940_v38 = vpop.eup %1939 }
 0x332   : > { %v1942_v41 = vpop.eup %1941 }
 0x333   : > { %v1089_v11 = vmul.f32 %v1934_v2, %v1088_v9  ;;  %v1944_v53 = vpop.eup %1943 }
 0x334   : > { %v1946_v24 = vpop.eup %1945 }
 0x335   : > { %v1090_v13 = vadd.f32 %v1934_v2, %v1089_v11 }
 0x337   : > { %v1094_v15 = vsel %vm1093_vm9, %v1934_v2, %v1090_v13 }
 0x338   : > { %v1099_v17 = vsel %vm1096_vm10, %v1098_v14, %v1094_v15 }
 0x339   : > { %1117 = vrot.lane.b32.xlu2 %v1099_v17, %s2024_s14 }
 0x37b   : > { %v1112_v8 = vpop.permute.xlu2 %1111 }
 0x37c   : > { %v1127_v46 = vmul.f32 %v1940_v38, %v1112_v8 }
 0x383   : > { %v1108_v20 = vpop.permute.xlu0 %1107 }
 0x384   : > { %v1125_v30 = vmul.f32 %v1936_v22, %v1108_v20 }
 0x38b   : > { %v1110_v28 = vpop.permute.xlu1 %1109 }
 0x38c   : > { %v1126_v31 = vmul.f32 %v1938_v23, %v1110_v28 }
 0x38e   : > { %v1131_v33 = vpack.c.bf16 %v1126_v31, %v1125_v30 }
 0x390   : > { %1760 = vmatmul.msk.bf16.vlgmr.msra.gmra.mxu0 %vm350_vm2, %v1131_v33 }
 0x393   : > { %v1118_v52 = vpop.permute.xlu2 %1117 }
 0x394   : > { %v1130_v19 = vmul.f32 %v1946_v24, %v1118_v52 }
 0x39b   : > { %v1114_v45 = vpop.permute.xlu0 %1113 }
 0x39c   : > { %v1128_v61 = vmul.f32 %v1942_v41, %v1114_v45  ;;  %v2392_v45 = vld [vmem:[%s2471_s4 + $0x2] ss:$0 sm:$0xff] }
 0x39e   : > { %v1132_v48 = vpack.c.bf16 %v1128_v61, %v1127_v46 }
 0x3a0   : > { %1761 = vmatmul.msk.bf16.gmra.mxu0 %vm350_vm2, %v1132_v48 }
 0x3a3   : > { %v1116_v18 = vpop.permute.xlu1 %1115 }
 0x3a4   : > { %v1129_v54 = vmul.f32 %v1944_v53, %v1116_v18 }
 0x3a6   : > { %v1133_v42 = vpack.c.bf16 %v1130_v19, %v1129_v54 }
 0x3b0   : > { %1762 = vmatmul.msk.bf16.gmra.mxu0 %vm350_vm2, %v1133_v42 }
 0x40d   : > { %v1166_v34 = vpop.f32.mrf.mxu0 }
 0x40e   : > { %v1167_v51 = vadd.f32 %v1872_v62, %v1166_v34 }
 0x410   : > { %v1185_v27 = vsel %vm2126_vm7, %v1167_v51, 0.0 }
 0x411   : > { %1191 = vst.msk [vmem:[#allocation2 + $0x8] sm:$0xff] %vm350_vm2, %v1185_v27 }
 0x415   : > { %v1168_v55 = vpop.f32.mrf.mxu0 }
 0x416   : > { %v1169_v57 = vadd.f32 %v1872_v62, %v1168_v55 }
 0x418   : > { %v2351_v58 = vadd.f32 %v1169_v57, %v795_v56  ;;  %v1186_v59 = vsel %vm2149_vm0, %v1169_v57, 0.0  ;;  %v1209_v0 = vld [vmem:[#allocation2 + $0x8] sm:$0xff] }
 0x419   : > { %1192 = vst.msk [vmem:[#allocation2 + $0x10] sm:$0xff] %vm350_vm2, %v1186_v59  ;;  %v1197_v4 = vld [vmem:[#allocation2 + $0x4] sm:$0xff] }
 0x41d   : > { %v1171_v60 = vpop.f32.mrf.mxu0 }
 0x41e   : > { %v1172_v25 = vadd.f32 %v1872_v62, %v1171_v60 }
 0x420   : > { %v2358_v49 = vadd.f32 %v1172_v25, %v796_v21  ;;  %v1187_v2 = vsel %vm2130_vm8, %v1172_v25, 0.0  ;;  %v1210_v43 = vld [vmem:[#allocation2 + $0x10] sm:$0xff] }
 0x421   : > { %v1198_v63 = vld [vmem:[#allocation2 + $0xc] sm:$0xff]  ;;  %1193 = vst.msk [vmem:[#allocation2 + $0x18] sm:$0xff] %vm350_vm2, %v1187_v2  ;;  %v1215_v40 = vpack.c.bf16 %v1210_v43, %v1209_v0 }
 0x422   : > { %v1203_v3 = vpack.c.bf16 %v1198_v63, %v1197_v4 }
 0x423   : > { %1771 = vmatmul.msk.bf16.vlgmr.msrb.gmra.mxu1 %vm350_vm2, %v1215_v40 }
 0x424   : > { %1778 = vmatmul.msk.bf16.vlgmr.msrb.gmra.mxu2 %vm350_vm2, %v1203_v3 }
 0x425   : > { %v1173_v5 = vpop.f32.mrf.mxu0 }
 0x426   : > { %v1174_v7 = vadd.f32 %v1872_v62, %v1173_v5 }
 0x428   : > { %v2367_v6 = vadd.f32 %v1174_v7, %v797_v32  ;;  %v1188_v29 = vsel %vm2155_vm1, %v1174_v7, 0.0  ;;  %v1300_v9 = vld [vmem:[#allocation2 + $0x14] sm:$0xff] }
 0x429   : > { %1194 = vst.msk [vmem:[#allocation2 + $0x20] sm:$0xff] %vm350_vm2, %v1188_v29  ;;  %v1305_v10 = vpack.c.bf16 %v1300_v9, %v1198_v63  ;;  %v1211_v16 = vld [vmem:[#allocation2 + $0x18] sm:$0xff] }
 0x42b   : > { %1787 = vmatmul.msk.bf16.vlgmr.msra.gmra.mxu3 %vm350_vm2, %v1305_v10 }
 0x42d   : > { %v1176_v11 = vpop.f32.mrf.mxu0 }
 0x42e   : > { %v1177_v13 = vadd.f32 %v1872_v62, %v1176_v11 }
 0x430   : > { %v2375_v14 = vadd.f32 %v1177_v13, %v798_v12  ;;  %v1189_v47 = vsel %vm2143_vm15, %v1177_v13, 0.0  ;;  %v1212_v15 = vld [vmem:[#allocation2 + $0x20] sm:$0xff] }
 0x431   : > { %v1200_v44 = vld [vmem:[#allocation2 + $0x1c] sm:$0xff]  ;;  %1195 = vst.msk [vmem:[#allocation2 + $0x28] sm:$0xff] %vm350_vm2, %v1189_v47  ;;  %v1216_v17 = vpack.c.bf16 %v1212_v15, %v1211_v16 }
 0x432   : > { %v1204_v20 = vpack.c.bf16 %v1200_v44, %v1300_v9 }
 0x433   : > { %1772 = vmatmul.msk.bf16.gmra.mxu1 %vm350_vm2, %v1216_v17 }
 0x434   : > { %1779 = vmatmul.msk.bf16.gmra.mxu2 %vm350_vm2, %v1204_v20 }
 0x435   : > { %v1178_v22 = vpop.f32.mrf.mxu0 }
 0x436   : > { %v1179_v23 = vadd.f32 %v1872_v62, %v1178_v22 }
 0x438   : > { %v1190_v39 = vsel %vm2173_vm5, %v1179_v23, 0.0  ;;  %v1302_v26 = vld [vmem:[#allocation2 + $0x24] sm:$0xff] }
 0x439   : > { %1196 = vst.msk [vmem:[#allocation2 + $0x30] sm:$0xff] %vm350_vm2, %v1190_v39  ;;  %v1306_v37 = vpack.c.bf16 %v1302_v26, %v1200_v44  ;;  %v1213_v28 = vld [vmem:[#allocation2 + $0x28] sm:$0xff] }
 0x43b   : > { %1788 = vmatmul.msk.bf16.gmra.mxu3 %vm350_vm2, %v1306_v37 }
 0x440   : > { %v1214_v30 = vld [vmem:[#allocation2 + $0x30] sm:$0xff] }
 0x441   : > { %v1202_v31 = vld [vmem:[#allocation2 + $0x2c] sm:$0xff]  ;;  %v1217_v33 = vpack.c.bf16 %v1214_v30, %v1213_v28  ;;  %v1304_v36 = vld [vmem:[#allocation2 + $0x34] sm:$0xff] }
 0x442   : > { %v1205_v35 = vpack.c.bf16 %v1202_v31, %v1302_v26  ;;  %v1307_v1 = vpack.c.bf16 %v1304_v36, %v1202_v31 }
 0x443   : > { %1773 = vmatmul.msk.bf16.gmra.mxu1 %vm350_vm2, %v1217_v33 }
 0x444   : > { %1780 = vmatmul.msk.bf16.gmra.mxu2 %vm350_vm2, %v1205_v35 }
 0x44b   : > { %1789 = vmatmul.msk.bf16.gmra.mxu3 %vm350_vm2, %v1307_v1 }
 0x4a0   : > { %v1245_v50 = vpop.f32.mrf.mxu1 }
 0x4a7   : > { %v1284_v8 = vpop.f32.mrf.mxu2 }
 0x4a8   : > { %v1247_v38 = vpop.f32.mrf.mxu1  ;;  %v1285_v41 = vadd.f32 %v1284_v8, %v1245_v50 }
 0x4ae   : > { %v1335_v61 = vpop.f32.mrf.mxu3 }
 0x4af   : > { %v1286_v46 = vpop.f32.mrf.mxu2  ;;  %v1350_v48 = vadd.f32 %v1335_v61, %v1285_v41 }
 0x4b0   : > { %v1287_v24 = vadd.f32 %v1286_v46, %v1247_v38  ;;  %v1250_v18 = vpop.f32.mrf.mxu1 }
 0x4b1   : > { %v2395_v52 = vadd.f32 %v2392_v45, %v1350_v48 }
 0x4b3   : > { %v1791_v53 = vmul.f32 -1.442695, %v2395_v52 }
 0x4b5   : > { %1947 = vpow2.f32 %v1791_v53 }
 0x4b6   : > { %v1337_v54 = vpop.f32.mrf.mxu3 }
 0x4b7   : > { %v1289_v19 = vpop.f32.mrf.mxu2  ;;  %v1351_v42 = vadd.f32 %v1337_v54, %v1287_v24 }
 0x4b8   : > { %v1290_v55 = vadd.f32 %v1289_v19, %v1250_v18  ;;  %v1252_v60 = vpop.f32.mrf.mxu1 }
 0x4b9   : > { %v2399_v62 = vadd.f32 %v2392_v45, %v1351_v42  ;;  %v1820_v42 = vld [vmem:[%s2472_s5 + $0x10] sm:$0xff] }
 0x4ba   : > { %1550 = vmatpush.bf16.msrb.mxu0 %v1820_v42 }
 0x4bb   : > { %v1948_v34 = vpop.eup %1947  ;;  %v1792_v51 = vmul.f32 -1.442695, %v2399_v62 }
 0x4bc   : > { %v1391_v27 = vadd.f32 1.0, %v1948_v34 }
 0x4bd   : > { %1949 = vpow2.f32 %v1792_v51 }
 0x4be   : > { %1951 = vrcp.f32 %v1391_v27  ;;  %v1340_v57 = vpop.f32.mrf.mxu3  ;;  %v1406_v7 = vand.u32 2147483647, %v1391_v27  ;;  %v1408_v29 = vand.u32 2147483648, %v1391_v27  ;;  %vm1402_vm8 = vweird.f32 %v1391_v27 }
 0x4bf   : > { %v1291_v56 = vpop.f32.mrf.mxu2  ;;  %v1352_v59 = vadd.f32 %v1340_v57, %v1290_v55 }
 0x4c0   : > { %v1292_v4 = vadd.f32 %v1291_v56, %v1252_v60  ;;  %v1255_v11 = vpop.f32.mrf.mxu1  ;;  %vm1407_vm0 = vcmp.eq.f32.partialorder %v1406_v7, 8.507059e+37  ;;  %v1409_v44 = vor.u32 1.1754944e-38, %v1408_v29 }
 0x4c1   : > { %v2403_v21 = vadd.f32 %v2392_v45, %v1352_v59 }
 0x4c3   : > { %v1950_v25 = vpop.eup %1949  ;;  %v1793_v0 = vmul.f32 -1.442695, %v2403_v21 }
 0x4c4   : > { %v1952_v2 = vpop.eup %1951  ;;  %v1392_v43 = vadd.f32 1.0, %v1950_v25 }
 0x4c5   : > { %1953 = vpow2.f32 %v1793_v0  ;;  %v1398_v63 = vmul.f32 %v1952_v2, %v1391_v27  ;;  %vm1403_vm7 = vweird.f32 %v1952_v2 }
 0x4c6   : > { %1955 = vrcp.f32 %v1392_v43  ;;  %v1342_v40 = vpop.f32.mrf.mxu3  ;;  %vm1404_vm15 = vmor %vm1402_vm8, %vm1403_vm7  ;;  %v1421_v28 = vand.u32 2147483647, %v1392_v43  ;;  %v1423_v30 = vand.u32 2147483648, %v1392_v43  ;;  %vm1417_vm5 = vweird.f32 %v1392_v43 }
 0x4c7   : > { %v1353_v3 = vadd.f32 %v1342_v40, %v1292_v4  ;;  %v1399_v5 = vsub.f32 1.0, %v1398_v63  ;;  %v1294_v32 = vpop.f32.mrf.mxu2 }
 0x4c8   : > { %v1295_v17 = vadd.f32 %v1294_v32, %v1255_v11  ;;  %v1257_v41 = vpop.f32.mrf.mxu1  ;;  %vm1422_vm12 = vcmp.eq.f32.partialorder %v1421_v28, 8.507059e+37  ;;  %v1424_v46 = vor.u32 1.1754944e-38, %v1423_v30 }
 0x4c9   : > { %v2407_v9 = vadd.f32 %v2392_v45, %v1353_v3  ;;  %v1400_v10 = vmul.f32 %v1952_v2, %v1399_v5 }
 0x4cb   : > { %v1954_v12 = vpop.eup %1953  ;;  %v1794_v13 = vmul.f32 -1.442695, %v2407_v9  ;;  %v1401_v47 = vadd.f32 %v1952_v2, %v1400_v10 }
 0x4cc   : > { %v1956_v16 = vpop.eup %1955  ;;  %v1393_v15 = vadd.f32 1.0, %v1954_v12 }
 0x4cd   : > { %1957 = vpow2.f32 %v1794_v13  ;;  %v1405_v20 = vsel %vm1404_vm15, %v1952_v2, %v1401_v47  ;;  %v1413_v22 = vmul.f32 %v1956_v16, %v1392_v43  ;;  %vm1418_vm1 = vweird.f32 %v1956_v16 }
 0x4ce   : > { %1959 = vrcp.f32 %v1393_v15  ;;  %v1345_v23 = vpop.f32.mrf.mxu3  ;;  %v1410_v39 = vsel %vm1407_vm0, %v1409_v44, %v1405_v20  ;;  %vm1419_vm11 = vmor %vm1417_vm5, %vm1418_vm1  ;;  %v1438_v34 = vand.u32 2147483648, %v1393_v15  ;;  %v1436_v55 = vand.u32 2147483647, %v1393_v15 }
 0x4cf   : > { %v1354_v26 = vadd.f32 %v1345_v23, %v1295_v17  ;;  %1493 = vrot.lane.b32.xlu0 %v1410_v39, %s2024_s14  ;;  %v1414_v37 = vsub.f32 1.0, %v1413_v22  ;;  %v1296_v35 = vpop.f32.mrf.mxu2  ;;  %vm1432_vm14 = vweird.f32 %v1393_v15 }
 0x4d0   : > { %v1297_v61 = vadd.f32 %v1296_v35, %v1257_v41  ;;  %v1439_v0 = vor.u32 1.1754944e-38, %v1438_v34  ;;  %vm1437_vm4 = vcmp.eq.f32.partialorder %v1436_v55, 8.507059e+37 }
 0x4d1   : > { %v2412_v31 = vadd.f32 %v2392_v45, %v1354_v26  ;;  %v1415_v33 = vmul.f32 %v1956_v16, %v1414_v37 }
 0x4d3   : > { %v1958_v36 = vpop.eup %1957  ;;  %v1795_v1 = vmul.f32 -1.442695, %v2412_v31  ;;  %v1416_v50 = vadd.f32 %v1956_v16, %v1415_v33 }
 0x4d4   : > { %v1960_v8 = vpop.eup %1959  ;;  %v1394_v38 = vadd.f32 1.0, %v1958_v36 }
 0x4d5   : > { %1961 = vpow2.f32 %v1795_v1  ;;  %v1420_v48 = vsel %vm1419_vm11, %v1956_v16, %v1416_v50  ;;  %v1428_v53 = vmul.f32 %v1960_v8, %v1393_v15  ;;  %vm1433_vm13 = vweird.f32 %v1960_v8 }
 0x4d6   : > { %1963 = vrcp.f32 %v1394_v38  ;;  %v1347_v24 = vpop.f32.mrf.mxu3  ;;  %v1425_v18 = vsel %vm1422_vm12, %v1424_v46, %v1420_v48  ;;  %vm1434_vm3 = vmor %vm1432_vm14, %vm1433_vm13  ;;  %v1453_v63 = vand.u32 2147483648, %v1394_v38  ;;  %v1451_v3 = vand.u32 2147483647, %v1394_v38 }
 0x4d7   : > { %v1355_v19 = vadd.f32 %v1347_v24, %v1297_v61  ;;  %1495 = vrot.lane.b32.xlu1 %v1425_v18, %s2024_s14  ;;  %v1429_v54 = vsub.f32 1.0, %v1428_v53  ;;  %vm1447_vm9 = vweird.f32 %v1394_v38 }
 0x4d8   : > { %v1454_v10 = vor.u32 1.1754944e-38, %v1453_v63  ;;  %vm1452_vm7 = vcmp.eq.f32.partialorder %v1451_v3, 8.507059e+37 }
 0x4d9   : > { %v2420_v51 = vadd.f32 %v2392_v45, %v1355_v19  ;;  %v1430_v27 = vmul.f32 %v1960_v8, %v1429_v54 }
 0x4db   : > { %v1962_v56 = vpop.eup %1961  ;;  %v1796_v57 = vmul.f32 -1.442695, %v2420_v51  ;;  %v1431_v59 = vadd.f32 %v1960_v8, %v1430_v27 }
 0x4dc   : > { %v1964_v60 = vpop.eup %1963  ;;  %v1395_v25 = vadd.f32 1.0, %v1962_v56 }
 0x4dd   : > { %1965 = vpow2.f32 %v1796_v57  ;;  %v1435_v2 = vsel %vm1434_vm3, %v1960_v8, %v1431_v59  ;;  %v1443_v43 = vmul.f32 %v1964_v60, %v1394_v38  ;;  %vm1448_vm6 = vweird.f32 %v1964_v60 }
 0x4de   : > { %1967 = vrcp.f32 %v1395_v25  ;;  %v1440_v45 = vsel %vm1437_vm4, %v1439_v0, %v1435_v2  ;;  %vm1449_vm10 = vmor %vm1447_vm9, %vm1448_vm6  ;;  %v1468_v16 = vand.u32 2147483648, %v1395_v25  ;;  %v1466_v44 = vand.u32 2147483647, %v1395_v25 }
 0x4df   : > { %1497 = vrot.lane.b32.xlu2 %v1440_v45, %s2024_s14  ;;  %v1444_v4 = vsub.f32 1.0, %v1443_v43  ;;  %vm1462_vm15 = vweird.f32 %v1395_v25 }
 0x4e0   : > { %v1469_v22 = vor.u32 1.1754944e-38, %v1468_v16  ;;  %vm1467_vm1 = vcmp.eq.f32.partialorder %v1466_v44, 8.507059e+37 }
 0x4e1   : > { %v1445_v40 = vmul.f32 %v1964_v60, %v1444_v4 }
 0x4e3   : > { %v1966_v5 = vpop.eup %1965  ;;  %v1446_v32 = vadd.f32 %v1964_v60, %v1445_v40 }
 0x4e4   : > { %v1968_v7 = vpop.eup %1967  ;;  %v1396_v29 = vadd.f32 1.0, %v1966_v5 }
 0x4e5   : > { %v1450_v11 = vsel %vm1449_vm10, %v1964_v60, %v1446_v32  ;;  %v1458_v12 = vmul.f32 %v1968_v7, %v1395_v25  ;;  %vm1463_vm8 = vweird.f32 %v1968_v7 }
 0x4e6   : > { %1969 = vrcp.f32 %v1396_v29  ;;  %v1455_v13 = vsel %vm1452_vm7, %v1454_v10, %v1450_v11  ;;  %vm1464_vm0 = vmor %vm1462_vm15, %vm1463_vm8  ;;  %v1483_v28 = vand.u32 2147483648, %v1396_v29  ;;  %v1481_v33 = vand.u32 2147483647, %v1396_v29 }
 0x4e7   : > { %1499 = vrot.lane.b32.xlu0 %v1455_v13, %s2024_s14  ;;  %v1459_v47 = vsub.f32 1.0, %v1458_v12  ;;  %vm1477_vm11 = vweird.f32 %v1396_v29  ;;  %1971 = vtanh.f32 %v2395_v52 }
 0x4e8   : > { %v1484_v36 = vor.u32 1.1754944e-38, %v1483_v28  ;;  %vm1482_vm13 = vcmp.eq.f32.partialorder %v1481_v33, 8.507059e+37  ;;  %1973 = vtanh.f32 %v2399_v62 }
 0x4e9   : > { %v1460_v15 = vmul.f32 %v1968_v7, %v1459_v47  ;;  %1975 = vtanh.f32 %v2403_v21 }
 0x4ea   : > { %1977 = vtanh.f32 %v2407_v9 }
 0x4eb   : > { %v1461_v17 = vadd.f32 %v1968_v7, %v1460_v15  ;;  %1979 = vtanh.f32 %v2412_v31  ;;  %v1874_v31 = vld [vmem:[%s2473_s6 + $0x2] ss:$0 sm:$0xff] }
 0x4ec   : > { %v1970_v20 = vpop.eup %1969  ;;  %1981 = vtanh.f32 %v2420_v51 }
 0x4ed   : > { %v1465_v23 = vsel %vm1464_vm0, %v1968_v7, %v1461_v17  ;;  %v1473_v39 = vmul.f32 %v1970_v20, %v1396_v29  ;;  %vm1478_vm5 = vweird.f32 %v1970_v20  ;;  %v1972_v38 = vpop.eup %1971 }
 0x4ee   : > { %v1470_v26 = vsel %vm1467_vm1, %v1469_v22, %v1465_v23  ;;  %vm1479_vm12 = vmor %vm1477_vm11, %vm1478_vm5  ;;  %v1974_v41 = vpop.eup %1973 }
 0x4ef   : > { %1501 = vrot.lane.b32.xlu1 %v1470_v26, %s2024_s14  ;;  %v1474_v37 = vsub.f32 1.0, %v1473_v39  ;;  %v1976_v18 = vpop.eup %1975 }
 0x4f0   : > { %v1978_v19 = vpop.eup %1977 }
 0x4f1   : > { %v1475_v30 = vmul.f32 %v1970_v20, %v1474_v37  ;;  %v1980_v27 = vpop.eup %1979 }
 0x4f2   : > { %v1982_v21 = vpop.eup %1981 }
 0x4f3   : > { %v1476_v35 = vadd.f32 %v1970_v20, %v1475_v30 }
 0x4f5   : > { %v1480_v1 = vsel %vm1479_vm12, %v1970_v20, %v1476_v35 }
 0x4f6   : > { %v1485_v50 = vsel %vm1482_vm13, %v1484_v36, %v1480_v1 }
 0x4f7   : > { %1503 = vrot.lane.b32.xlu2 %v1485_v50, %s2024_s14  ;;  %s1825_s14 = smul.u32 12, %s2498_s25 }
 0x4f9   : > { %s312_s12 = sadd.s32 %s1825_s14, %s1674_s11 }
 0x4fa   : > { %s1675_s15 = sshll.u32 %s312_s12, 3 }
 0x4fb   : > { %s314_s18 = scalar_lea.vmem %s2474_s7, %s1675_s15 }
 0x539   : > { %v1498_v24 = vpop.permute.xlu2 %1497 }
 0x53a   : > { %v1513_v52 = vmul.f32 %v1976_v18, %v1498_v24 }
 0x541   : > { %v1494_v8 = vpop.permute.xlu0 %1493 }
 0x542   : > { %v1511_v61 = vmul.f32 %v1972_v38, %v1494_v8 }
 0x549   : > { %v1496_v46 = vpop.permute.xlu1 %1495 }
 0x54a   : > { %v1512_v48 = vmul.f32 %v1974_v41, %v1496_v46 }
 0x54c   : > { %v1517_v53 = vpack.c.bf16 %v1512_v48, %v1511_v61 }
 0x54e   : > { %1804 = vmatmul.msk.bf16.vlgmr.msrb.gmra.mxu0 %vm350_vm2, %v1517_v53 }
 0x551   : > { %v1504_v34 = vpop.permute.xlu2 %1503 }
 0x552   : > { %v1516_v9 = vmul.f32 %v1982_v21, %v1504_v34 }
 0x559   : > { %v1500_v54 = vpop.permute.xlu0 %1499 }
 0x55a   : > { %v1514_v62 = vmul.f32 %v1978_v19, %v1500_v54 }
 0x55c   : > { %v1518_v42 = vpack.c.bf16 %v1514_v62, %v1513_v52 }
 0x55e   : > { %1805 = vmatmul.msk.bf16.gmra.mxu0 %vm350_vm2, %v1518_v42 }
 0x561   : > { %v1502_v55 = vpop.permute.xlu1 %1501 }
 0x562   : > { %v1515_v56 = vmul.f32 %v1980_v27, %v1502_v55 }
 0x564   : > { %v1519_v57 = vpack.c.bf16 %v1516_v9, %v1515_v56 }
 0x56e   : > { %1806 = vmatmul.msk.bf16.gmra.mxu0 %vm350_vm2, %v1519_v57 }
 0x5cb   : > { %v1552_v59 = vpop.f32.mrf.mxu0 }
 0x5d3   : > { %v1553_v51 = vpop.f32.mrf.mxu0 }
 0x5d4   : > { %v1554_v60 = vadd.f32 %v1874_v31, %v1553_v51 }
 0x5d6   : > { %v1565_v25 = vadd.f32 %v1554_v60, %v2351_v58 }
 0x5d8   : > { %1569 = vst.msk [vmem:[%s314_s18] sm:$0xff] %vm350_vm2, %v1565_v25 }
 0x5db   : > { %v1556_v0 = vpop.f32.mrf.mxu0 }
 0x5dc   : > { %v1557_v2 = vadd.f32 %v1874_v31, %v1556_v0 }
 0x5de   : > { %v1566_v43 = vadd.f32 %v1557_v2, %v2358_v49 }
 0x5e0   : > { %1570 = vst.msk [vmem:[%s314_s18 + $0x8] sm:$0xff] %vm350_vm2, %v1566_v43 }
 0x5e3   : > { %v1558_v45 = vpop.f32.mrf.mxu0 }
 0x5e4   : > { %v1559_v4 = vadd.f32 %v1874_v31, %v1558_v45 }
 0x5e6   : > { %v1567_v63 = vadd.f32 %v1559_v4, %v2367_v6 }
 0x5e8   : > { %1571 = vst.msk [vmem:[%s314_s18 + $0x10] sm:$0xff] %vm350_vm2, %v1567_v63 }
 0x5eb   : > { %v1561_v40 = vpop.f32.mrf.mxu0 }
 0x5ec   : > { %v1562_v3 = vadd.f32 %v1874_v31, %v1561_v40 }
 0x5ee   : > { %v1568_v5 = vadd.f32 %v1562_v3, %v2375_v14 }
 0x5f0   : > { %1572 = vst.msk [vmem:[%s314_s18 + $0x18] sm:$0xff] %vm350_vm2, %v1568_v5 }
 0x5f3   : > { %v1563_v58 = vpop.f32.mrf.mxu0 }
 0x5f4 PF: > { %s17_s28 = sadd.s32 1, %s2021_s28   ;;  %s2487_s24 = smov %s2013_s26 }
 0x5f5   : > { %p14_p7 = scmp.ge.s32.totalorder %s17_s28, 8   ;;  %s2488_s25 = smov %s2017_s27 }
 0x5f6   : > { %s2489_s26 = smov %s2492_s29  ;;  %s2490_s27 = smov %s2496_s30 }
 0x5f7   :  { %16 = sbr.rel (!%p14_p7) target bundleno = 3 (0x3), region = 92 }

</bundles_post_ra>
